<compile_context>
chip_gen: v6e
topology: v6e:2x2x1
jax: 0.10.0
libtpu: 0.0.40
codegen_flags: <defaults>
</compile_context>

<pallas_src>
import functools

import jax
import jax.numpy as jnp
from jax.experimental import pallas as pl
from jax.experimental.pallas import tpu as pltpu


# ----------------------------- model config --------------------------------

CFG = dict(
    num_nodes=16, input_len=8, output_len=8, his_len=24,
    if_enhance=1, enhance_dim=16,
    if_en=0, if_de=0,                       # transformer branches disabled
    fusion_num_step=2, fusion_num_layer=1, fusion_dim=32,
    fusion_out_dim=16, fusion_dropout=0.1,
    if_forward=1, if_backward=1, node_dim=16, nhead=1,
    if_T_i_D=1, if_D_i_W=1, temp_dim_tid=8, temp_dim_diw=8,
    steps_per_day=12,
)


# --------------------------- fused Pallas kernel ----------------------------

def _build_fused_kernel(cfg, batch_size):
    """Build the single fused forward kernel for a given static config / batch."""
    n_steps = cfg["fusion_num_step"]
    n_inner = cfg["fusion_num_layer"]
    out_dim = cfg["fusion_out_dim"]
    if_enh = bool(cfg["if_enhance"])

    def kernel(*refs):
        refs = list(refs)
        out_ref = refs.pop()                      # single output ref (last positional)
        pos = 0

        def nxt():
            nonlocal pos
            r = refs[pos]
            pos += 1
            return r

        # ---- data inputs ----
        x = nxt()[...]                            # [B*N, input_len]
        long_in = nxt()[...] if if_enh else None  # [B*N, his_len]
        adj_f = nxt()[...]                        # [N, N]
        adj_b = nxt()[...]                        # [N, N]
        tid = nxt()[...]                          # [B*N, temp_dim_tid]
        diw = nxt()[...]                          # [B*N, temp_dim_diw]

        def lin(a, relu=False):
            w = nxt()[...]
            b = nxt()[...]
            y = jnp.dot(a, w, preferred_element_type=jnp.float32) + b
            return jnp.maximum(y, 0.0) if relu else y

        # ---- enhancement branch: long_linear (Linear, no activation) ----
        if if_enh:
            long_emb = lin(long_in)                               # [B*N, enhance_dim]
            ts = jnp.concatenate([long_emb, x], axis=1)           # [B*N, enh+input_len]
        else:
            ts = x

        # ---- GraphMLP: Linear(N->node_dim) -> ReLU -> Linear(node_dim->node_dim) ----
        nf = lin(lin(adj_f, relu=True))                           # [N, node_dim]
        nb = lin(lin(adj_b, relu=True))                           # [N, node_dim]
        node_f = jnp.concatenate([nf] * batch_size, axis=0)       # [B*N, node_dim]
        node_b = jnp.concatenate([nb] * batch_size, axis=0)       # [B*N, node_dim]
        st_f = jnp.concatenate([node_f, tid, diw], axis=1)        # [B*N, st_dim]
        st_b = jnp.concatenate([node_b, tid, diw], axis=1)        # [B*N, st_dim]

        # ---- fusion steps (fwd/bwd branches merged block-diagonally) ----
        hid = None
        predict = None
        preds = []
        for step in range(n_steps):
            ts_in = ts if step == 0 else predict
            # h = [feat_forward | feat_backward]  -> [B*N, 2d]
            h = jnp.concatenate([ts_in, st_f, ts_in, st_b], axis=1)
            for _ in range(n_inner):
                w1 = nxt()[...]; b1 = nxt()[...]
                w2 = nxt()[...]; b2 = nxt()[...]
                t = jnp.maximum(
                    jnp.dot(h, w1, preferred_element_type=jnp.float32) + b1, 0.0)
                h = h + jnp.dot(t, w2, preferred_element_type=jnp.float32) + b2
            p = lin(h)                                            # [B*N, 2*out_dim] = pf|pb
            if hid is not None:
                p = p + hid
            hid = p
            predict = p[:, :out_dim] + p[:, out_dim:]             # pf + pb
            preds.append(predict)

        y = jnp.concatenate(preds, axis=1) if n_steps > 1 else preds[0]

        # ---- regression head (only when fusion_num_step > 1) ----
        if n_steps > 1:
            for _ in range(n_inner):
                w1 = nxt()[...]; b1 = nxt()[...]
                w2 = nxt()[...]; b2 = nxt()[...]
                t = jnp.maximum(
                    jnp.dot(y, w1, preferred_element_type=jnp.float32) + b1, 0.0)
                y = y + jnp.dot(t, w2, preferred_element_type=jnp.float32) + b2
            y = lin(y)                                            # [B*N, output_len]

        out_ref[...] = y

    return kernel


# --------------------------- parameter init --------------------------------

def init_params(cfg, key):
    keys = iter(jax.random.split(key, 256))

    def lin(i, o):
        w = jax.random.normal(next(keys), (i, o), jnp.float32) * 0.1
        b = jnp.zeros((1, o), jnp.float32)
        return w, b

    def block_diag(a, b):
        z01 = jnp.zeros((a.shape[0], b.shape[1]), jnp.float32)
        z10 = jnp.zeros((b.shape[0], a.shape[1]), jnp.float32)
        return jnp.concatenate(
            [jnp.concatenate([a, z01], axis=1),
             jnp.concatenate([z10, b], axis=1)], axis=0)

    n = cfg["num_nodes"]
    graph_num = cfg["if_forward"] + cfg["if_backward"]
    st_dim = ((graph_num > 0) * cfg["node_dim"]
              + cfg["if_T_i_D"] * cfg["temp_dim_tid"]
              + cfg["if_D_i_W"] * cfg["temp_dim_diw"])
    first_in = (st_dim + cfg["input_len"]
                + cfg["if_de"] * cfg["input_len"]
                + cfg["if_enhance"] * cfg["enhance_dim"])
    later_in = st_dim + cfg["fusion_out_dim"]
    output_dim = cfg["fusion_num_step"] * cfg["fusion_out_dim"]

    flat = []
    # enhancement linear
    if cfg["if_enhance"]:
        flat += list(lin(cfg["his_len"], cfg["enhance_dim"]))
    # graph encoders (forward, then backward)
    flat += list(lin(n, cfg["node_dim"])) + list(lin(cfg["node_dim"], cfg["node_dim"]))
    flat += list(lin(n, cfg["node_dim"])) + list(lin(cfg["node_dim"], cfg["node_dim"]))

    # fusion layers: per-branch weights packed block-diagonally (fwd on top-left,
    # bwd on bottom-right) so each step runs as one wide matmul chain.
    for step in range(cfg["fusion_num_step"]):
        d = first_in if step == 0 else later_in
        for _ in range(cfg["fusion_num_layer"]):
            w1f, b1f = lin(d, d); w2f, b2f = lin(d, d)
            w1b, b1b = lin(d, d); w2b, b2b = lin(d, d)
            flat += [block_diag(w1f, w1b), jnp.concatenate([b1f, b1b], axis=1),
                     block_diag(w2f, w2b), jnp.concatenate([b2f, b2b], axis=1)]
        wof, bof = lin(d, cfg["fusion_out_dim"])
        wob, bob = lin(d, cfg["fusion_out_dim"])
        flat += [block_diag(wof, wob), jnp.concatenate([bof, bob], axis=1)]

    # regression head
    if cfg["fusion_num_step"] > 1:
        for _ in range(cfg["fusion_num_layer"]):
            w1, b1 = lin(output_dim, output_dim)
            w2, b2 = lin(output_dim, output_dim)
            flat += [w1, b1, w2, b2]
        flat += list(lin(output_dim, cfg["output_len"]))

    tid_table = jax.random.normal(
        next(keys), (cfg["steps_per_day"], cfg["temp_dim_tid"]), jnp.float32) * 0.1
    diw_table = jax.random.normal(
        next(keys), (7, cfg["temp_dim_diw"]), jnp.float32) * 0.1

    return dict(flat_weights=flat, tid_table=tid_table, diw_table=diw_table)


# ------------------------------- forward -----------------------------------

def stbalance_forward(cfg, params, history_data, long_history_data, adj_fwd, adj_bwd):
    assert not cfg["if_en"] and not cfg["if_de"]          # transformer branches disabled
    assert cfg["if_forward"] and cfg["if_backward"]
    assert cfg["if_T_i_D"] and cfg["if_D_i_W"]

    b, l, n, _ = history_data.shape
    bn = b * n

    # ---- plain-JAX glue: transposes + embedding-table gathers (tiny) ----
    input_data = jnp.transpose(history_data[..., 0], (0, 2, 1)).reshape(bn, l)
    inputs = [input_data]
    if cfg["if_enhance"]:
        long_input = jnp.transpose(long_history_data[..., 0], (0, 2, 1)).reshape(bn, -1)
        inputs.append(long_input)
    inputs += [adj_fwd, adj_bwd]

    tid_idx = jnp.clip((history_data[:, -1, :, 1] * cfg["steps_per_day"]).astype(jnp.int32),
                       0, cfg["steps_per_day"] - 1)
    diw_idx = jnp.clip(history_data[:, -1, :, 2].astype(jnp.int32), 0, 6)
    inputs.append(params["tid_table"][tid_idx].reshape(bn, -1))
    inputs.append(params["diw_table"][diw_idx].reshape(bn, -1))

    args = inputs + list(params["flat_weights"])

    out_w = cfg["output_len"] if cfg["fusion_num_step"] > 1 else cfg["fusion_out_dim"]
    kernel = _build_fused_kernel(cfg, b)

    out2d = pl.pallas_call(
        kernel,
        out_shape=jax.ShapeDtypeStruct((bn, out_w), jnp.float32),
        in_specs=[pl.BlockSpec(memory_space=pltpu.MemorySpace.VMEM)] * len(args),
        out_specs=pl.BlockSpec(memory_space=pltpu.MemorySpace.VMEM),
    )(*args)

    # predicts.transpose(1, 2).unsqueeze(-1) -> [B, output_len, N, 1]
    out = out2d.reshape(b, n, out_w)
    return jnp.transpose(out, (0, 2, 1))[..., None]


# -------------------------------- main --------------------------------------

if __name__ == "__main__":
    cfg = CFG
    B, N, L, HL = 2, cfg["num_nodes"], cfg["input_len"], cfg["his_len"]

    key = jax.random.PRNGKey(0)
    k_hist, k_tid, k_diw, k_long, k_adj1, k_adj2, k_par = jax.random.split(key, 7)

    vals = jax.random.normal(k_hist, (B, L, N, 1), jnp.float32)
    tid = jax.random.uniform(k_tid, (B, L, N, 1), jnp.float32)                 # [0,1)
    diw = jax.random.randint(k_diw, (B, L, N, 1), 0, 7).astype(jnp.float32)    # 0..6
    history_data = jnp.concatenate([vals, tid, diw], axis=-1)                  # [B,L,N,3]
    long_history_data = jax.random.normal(k_long, (B, HL, N, 1), jnp.float32)

    adj_fwd = jax.nn.softmax(jax.random.normal(k_adj1, (N, N), jnp.float32), axis=-1)
    adj_bwd = jax.nn.softmax(jax.random.normal(k_adj2, (N, N), jnp.float32), axis=-1)

    params = init_params(cfg, k_par)

    fwd = jax.jit(functools.partial(stbalance_forward, cfg))
    out = fwd(params, history_data, long_history_data, adj_fwd, adj_bwd)
    out = jax.block_until_ready(out)

    assert out.shape == (B, cfg["output_len"], N, 1), out.shape
    assert bool(jnp.all(jnp.isfinite(out)))
    print("KERNEL_OK")
</pallas_src>

<mosaic_0001>
module attributes {stable_mosaic.version = 11 : i64} {
  func.func @kernel(%arg0: memref<32x8xf32, #tpu.memory_space<vmem>>, %arg1: memref<32x24xf32, #tpu.memory_space<vmem>>, %arg2: memref<16x16xf32, #tpu.memory_space<vmem>>, %arg3: memref<16x16xf32, #tpu.memory_space<vmem>>, %arg4: memref<32x8xf32, #tpu.memory_space<vmem>>, %arg5: memref<32x8xf32, #tpu.memory_space<vmem>>, %arg6: memref<24x16xf32, #tpu.memory_space<vmem>>, %arg7: memref<1x16xf32, #tpu.memory_space<vmem>>, %arg8: memref<16x16xf32, #tpu.memory_space<vmem>>, %arg9: memref<1x16xf32, #tpu.memory_space<vmem>>, %arg10: memref<16x16xf32, #tpu.memory_space<vmem>>, %arg11: memref<1x16xf32, #tpu.memory_space<vmem>>, %arg12: memref<16x16xf32, #tpu.memory_space<vmem>>, %arg13: memref<1x16xf32, #tpu.memory_space<vmem>>, %arg14: memref<16x16xf32, #tpu.memory_space<vmem>>, %arg15: memref<1x16xf32, #tpu.memory_space<vmem>>, %arg16: memref<112x112xf32, #tpu.memory_space<vmem>>, %arg17: memref<1x112xf32, #tpu.memory_space<vmem>>, %arg18: memref<112x112xf32, #tpu.memory_space<vmem>>, %arg19: memref<1x112xf32, #tpu.memory_space<vmem>>, %arg20: memref<112x32xf32, #tpu.memory_space<vmem>>, %arg21: memref<1x32xf32, #tpu.memory_space<vmem>>, %arg22: memref<96x96xf32, #tpu.memory_space<vmem>>, %arg23: memref<1x96xf32, #tpu.memory_space<vmem>>, %arg24: memref<96x96xf32, #tpu.memory_space<vmem>>, %arg25: memref<1x96xf32, #tpu.memory_space<vmem>>, %arg26: memref<96x32xf32, #tpu.memory_space<vmem>>, %arg27: memref<1x32xf32, #tpu.memory_space<vmem>>, %arg28: memref<32x32xf32, #tpu.memory_space<vmem>>, %arg29: memref<1x32xf32, #tpu.memory_space<vmem>>, %arg30: memref<32x32xf32, #tpu.memory_space<vmem>>, %arg31: memref<1x32xf32, #tpu.memory_space<vmem>>, %arg32: memref<32x8xf32, #tpu.memory_space<vmem>>, %arg33: memref<1x8xf32, #tpu.memory_space<vmem>>, %arg34: memref<32x8xf32, #tpu.memory_space<vmem>>) attributes {dimension_semantics = [], scalar_prefetch = 0 : i64, scratch_operands = 0 : i64, tpu.core_type = #tpu.core_type<tc>} {
    %c0 = arith.constant 0 : index
    %c0_0 = arith.constant 0 : index
    %0 = vector.load %arg0[%c0, %c0_0] : memref<32x8xf32, #tpu.memory_space<vmem>>, vector<32x8xf32>
    %c0_1 = arith.constant 0 : index
    %c0_2 = arith.constant 0 : index
    %1 = vector.load %arg1[%c0_1, %c0_2] : memref<32x24xf32, #tpu.memory_space<vmem>>, vector<32x24xf32>
    %c0_3 = arith.constant 0 : index
    %c0_4 = arith.constant 0 : index
    %2 = vector.load %arg2[%c0_3, %c0_4] : memref<16x16xf32, #tpu.memory_space<vmem>>, vector<16x16xf32>
    %c0_5 = arith.constant 0 : index
    %c0_6 = arith.constant 0 : index
    %3 = vector.load %arg3[%c0_5, %c0_6] : memref<16x16xf32, #tpu.memory_space<vmem>>, vector<16x16xf32>
    %c0_7 = arith.constant 0 : index
    %c0_8 = arith.constant 0 : index
    %4 = vector.load %arg4[%c0_7, %c0_8] : memref<32x8xf32, #tpu.memory_space<vmem>>, vector<32x8xf32>
    %c0_9 = arith.constant 0 : index
    %c0_10 = arith.constant 0 : index
    %5 = vector.load %arg5[%c0_9, %c0_10] : memref<32x8xf32, #tpu.memory_space<vmem>>, vector<32x8xf32>
    %c0_11 = arith.constant 0 : index
    %c0_12 = arith.constant 0 : index
    %6 = vector.load %arg6[%c0_11, %c0_12] : memref<24x16xf32, #tpu.memory_space<vmem>>, vector<24x16xf32>
    %c0_13 = arith.constant 0 : index
    %c0_14 = arith.constant 0 : index
    %7 = vector.load %arg7[%c0_13, %c0_14] : memref<1x16xf32, #tpu.memory_space<vmem>>, vector<1x16xf32>
    %cst = arith.constant dense<0.000000e+00> : vector<32x16xf32>
    %8 = tpu.matmul %1, %6, %cst {dimension_numbers = #tpu.dot_dimension_numbers<[1], [0], [0], [1], [0, 0, 1, 1], [], []>} : vector<32x24xf32>, vector<24x16xf32>, vector<32x16xf32> -> vector<32x16xf32>
    %9 = vector.broadcast %7 : vector<1x16xf32> to vector<32x16xf32>
    %10 = arith.addf %8, %9 : vector<32x16xf32>
    %11 = tpu.concatenate %10, %0 in 1 : vector<32x16xf32>, vector<32x8xf32> -> vector<32x24xf32>
    %c0_15 = arith.constant 0 : index
    %c0_16 = arith.constant 0 : index
    %12 = vector.load %arg8[%c0_15, %c0_16] : memref<16x16xf32, #tpu.memory_space<vmem>>, vector<16x16xf32>
    %c0_17 = arith.constant 0 : index
    %c0_18 = arith.constant 0 : index
    %13 = vector.load %arg9[%c0_17, %c0_18] : memref<1x16xf32, #tpu.memory_space<vmem>>, vector<1x16xf32>
    %cst_19 = arith.constant dense<0.000000e+00> : vector<16x16xf32>
    %14 = tpu.matmul %2, %12, %cst_19 {dimension_numbers = #tpu.dot_dimension_numbers<[1], [0], [0], [1], [0, 0, 1, 1], [], []>} : vector<16x16xf32>, vector<16x16xf32>, vector<16x16xf32> -> vector<16x16xf32>
    %15 = vector.broadcast %13 : vector<1x16xf32> to vector<16x16xf32>
    %16 = arith.addf %14, %15 : vector<16x16xf32>
    %cst_20 = arith.constant 0.000000e+00 : f32
    %17 = vector.broadcast %cst_20 : f32 to vector<16x16xf32>
    %18 = arith.maximumf %16, %17 : vector<16x16xf32>
    %c0_21 = arith.constant 0 : index
    %c0_22 = arith.constant 0 : index
    %19 = vector.load %arg10[%c0_21, %c0_22] : memref<16x16xf32, #tpu.memory_space<vmem>>, vector<16x16xf32>
    %c0_23 = arith.constant 0 : index
    %c0_24 = arith.constant 0 : index
    %20 = vector.load %arg11[%c0_23, %c0_24] : memref<1x16xf32, #tpu.memory_space<vmem>>, vector<1x16xf32>
    %cst_25 = arith.constant dense<0.000000e+00> : vector<16x16xf32>
    %21 = tpu.matmul %18, %19, %cst_25 {dimension_numbers = #tpu.dot_dimension_numbers<[1], [0], [0], [1], [0, 0, 1, 1], [], []>} : vector<16x16xf32>, vector<16x16xf32>, vector<16x16xf32> -> vector<16x16xf32>
    %22 = vector.broadcast %20 : vector<1x16xf32> to vector<16x16xf32>
    %23 = arith.addf %21, %22 : vector<16x16xf32>
    %c0_26 = arith.constant 0 : index
    %c0_27 = arith.constant 0 : index
    %24 = vector.load %arg12[%c0_26, %c0_27] : memref<16x16xf32, #tpu.memory_space<vmem>>, vector<16x16xf32>
    %c0_28 = arith.constant 0 : index
    %c0_29 = arith.constant 0 : index
    %25 = vector.load %arg13[%c0_28, %c0_29] : memref<1x16xf32, #tpu.memory_space<vmem>>, vector<1x16xf32>
    %cst_30 = arith.constant dense<0.000000e+00> : vector<16x16xf32>
    %26 = tpu.matmul %3, %24, %cst_30 {dimension_numbers = #tpu.dot_dimension_numbers<[1], [0], [0], [1], [0, 0, 1, 1], [], []>} : vector<16x16xf32>, vector<16x16xf32>, vector<16x16xf32> -> vector<16x16xf32>
    %27 = vector.broadcast %25 : vector<1x16xf32> to vector<16x16xf32>
    %28 = arith.addf %26, %27 : vector<16x16xf32>
    %cst_31 = arith.constant 0.000000e+00 : f32
    %29 = vector.broadcast %cst_31 : f32 to vector<16x16xf32>
    %30 = arith.maximumf %28, %29 : vector<16x16xf32>
    %c0_32 = arith.constant 0 : index
    %c0_33 = arith.constant 0 : index
    %31 = vector.load %arg14[%c0_32, %c0_33] : memref<16x16xf32, #tpu.memory_space<vmem>>, vector<16x16xf32>
    %c0_34 = arith.constant 0 : index
    %c0_35 = arith.constant 0 : index
    %32 = vector.load %arg15[%c0_34, %c0_35] : memref<1x16xf32, #tpu.memory_space<vmem>>, vector<1x16xf32>
    %cst_36 = arith.constant dense<0.000000e+00> : vector<16x16xf32>
    %33 = tpu.matmul %30, %31, %cst_36 {dimension_numbers = #tpu.dot_dimension_numbers<[1], [0], [0], [1], [0, 0, 1, 1], [], []>} : vector<16x16xf32>, vector<16x16xf32>, vector<16x16xf32> -> vector<16x16xf32>
    %34 = vector.broadcast %32 : vector<1x16xf32> to vector<16x16xf32>
    %35 = arith.addf %33, %34 : vector<16x16xf32>
    %36 = tpu.concatenate %23, %23 in 0 : vector<16x16xf32>, vector<16x16xf32> -> vector<32x16xf32>
    %37 = tpu.concatenate %35, %35 in 0 : vector<16x16xf32>, vector<16x16xf32> -> vector<32x16xf32>
    %38 = tpu.concatenate %36, %4, %5 in 1 : vector<32x16xf32>, vector<32x8xf32>, vector<32x8xf32> -> vector<32x32xf32>
    %39 = tpu.concatenate %37, %4, %5 in 1 : vector<32x16xf32>, vector<32x8xf32>, vector<32x8xf32> -> vector<32x32xf32>
    %40 = tpu.concatenate %11, %38, %11, %39 in 1 : vector<32x24xf32>, vector<32x32xf32>, vector<32x24xf32>, vector<32x32xf32> -> vector<32x112xf32>
    %c0_37 = arith.constant 0 : index
    %c0_38 = arith.constant 0 : index
    %41 = vector.load %arg16[%c0_37, %c0_38] : memref<112x112xf32, #tpu.memory_space<vmem>>, vector<112x112xf32>
    %c0_39 = arith.constant 0 : index
    %c0_40 = arith.constant 0 : index
    %42 = vector.load %arg17[%c0_39, %c0_40] : memref<1x112xf32, #tpu.memory_space<vmem>>, vector<1x112xf32>
    %c0_41 = arith.constant 0 : index
    %c0_42 = arith.constant 0 : index
    %43 = vector.load %arg18[%c0_41, %c0_42] : memref<112x112xf32, #tpu.memory_space<vmem>>, vector<112x112xf32>
    %c0_43 = arith.constant 0 : index
    %c0_44 = arith.constant 0 : index
    %44 = vector.load %arg19[%c0_43, %c0_44] : memref<1x112xf32, #tpu.memory_space<vmem>>, vector<1x112xf32>
    %cst_45 = arith.constant dense<0.000000e+00> : vector<32x112xf32>
    %45 = tpu.matmul %40, %41, %cst_45 {dimension_numbers = #tpu.dot_dimension_numbers<[1], [0], [0], [1], [0, 0, 1, 1], [], []>} : vector<32x112xf32>, vector<112x112xf32>, vector<32x112xf32> -> vector<32x112xf32>
    %46 = vector.broadcast %42 : vector<1x112xf32> to vector<32x112xf32>
    %47 = arith.addf %45, %46 : vector<32x112xf32>
    %cst_46 = arith.constant 0.000000e+00 : f32
    %48 = vector.broadcast %cst_46 : f32 to vector<32x112xf32>
    %49 = arith.maximumf %47, %48 : vector<32x112xf32>
    %cst_47 = arith.constant dense<0.000000e+00> : vector<32x112xf32>
    %50 = tpu.matmul %49, %43, %cst_47 {dimension_numbers = #tpu.dot_dimension_numbers<[1], [0], [0], [1], [0, 0, 1, 1], [], []>} : vector<32x112xf32>, vector<112x112xf32>, vector<32x112xf32> -> vector<32x112xf32>
    %51 = arith.addf %40, %50 : vector<32x112xf32>
    %52 = vector.broadcast %44 : vector<1x112xf32> to vector<32x112xf32>
    %53 = arith.addf %51, %52 : vector<32x112xf32>
    %c0_48 = arith.constant 0 : index
    %c0_49 = arith.constant 0 : index
    %54 = vector.load %arg20[%c0_48, %c0_49] : memref<112x32xf32, #tpu.memory_space<vmem>>, vector<112x32xf32>
    %c0_50 = arith.constant 0 : index
    %c0_51 = arith.constant 0 : index
    %55 = vector.load %arg21[%c0_50, %c0_51] : memref<1x32xf32, #tpu.memory_space<vmem>>, vector<1x32xf32>
    %cst_52 = arith.constant dense<0.000000e+00> : vector<32x32xf32>
    %56 = tpu.matmul %53, %54, %cst_52 {dimension_numbers = #tpu.dot_dimension_numbers<[1], [0], [0], [1], [0, 0, 1, 1], [], []>} : vector<32x112xf32>, vector<112x32xf32>, vector<32x32xf32> -> vector<32x32xf32>
    %57 = vector.broadcast %55 : vector<1x32xf32> to vector<32x32xf32>
    %58 = arith.addf %56, %57 : vector<32x32xf32>
    %59 = vector.extract_strided_slice %58 {offsets = [0, 0], sizes = [32, 16], strides = [1, 1]} : vector<32x32xf32> to vector<32x16xf32>
    %60 = vector.extract_strided_slice %58 {offsets = [0, 16], sizes = [32, 16], strides = [1, 1]} : vector<32x32xf32> to vector<32x16xf32>
    %61 = arith.addf %59, %60 : vector<32x16xf32>
    %62 = tpu.concatenate %61, %38, %61, %39 in 1 : vector<32x16xf32>, vector<32x32xf32>, vector<32x16xf32>, vector<32x32xf32> -> vector<32x96xf32>
    %c0_53 = arith.constant 0 : index
    %c0_54 = arith.constant 0 : index
    %63 = vector.load %arg22[%c0_53, %c0_54] : memref<96x96xf32, #tpu.memory_space<vmem>>, vector<96x96xf32>
    %c0_55 = arith.constant 0 : index
    %c0_56 = arith.constant 0 : index
    %64 = vector.load %arg23[%c0_55, %c0_56] : memref<1x96xf32, #tpu.memory_space<vmem>>, vector<1x96xf32>
    %c0_57 = arith.constant 0 : index
    %c0_58 = arith.constant 0 : index
    %65 = vector.load %arg24[%c0_57, %c0_58] : memref<96x96xf32, #tpu.memory_space<vmem>>, vector<96x96xf32>
    %c0_59 = arith.constant 0 : index
    %c0_60 = arith.constant 0 : index
    %66 = vector.load %arg25[%c0_59, %c0_60] : memref<1x96xf32, #tpu.memory_space<vmem>>, vector<1x96xf32>
    %cst_61 = arith.constant dense<0.000000e+00> : vector<32x96xf32>
    %67 = tpu.matmul %62, %63, %cst_61 {dimension_numbers = #tpu.dot_dimension_numbers<[1], [0], [0], [1], [0, 0, 1, 1], [], []>} : vector<32x96xf32>, vector<96x96xf32>, vector<32x96xf32> -> vector<32x96xf32>
    %68 = vector.broadcast %64 : vector<1x96xf32> to vector<32x96xf32>
    %69 = arith.addf %67, %68 : vector<32x96xf32>
    %cst_62 = arith.constant 0.000000e+00 : f32
    %70 = vector.broadcast %cst_62 : f32 to vector<32x96xf32>
    %71 = arith.maximumf %69, %70 : vector<32x96xf32>
    %cst_63 = arith.constant dense<0.000000e+00> : vector<32x96xf32>
    %72 = tpu.matmul %71, %65, %cst_63 {dimension_numbers = #tpu.dot_dimension_numbers<[1], [0], [0], [1], [0, 0, 1, 1], [], []>} : vector<32x96xf32>, vector<96x96xf32>, vector<32x96xf32> -> vector<32x96xf32>
    %73 = arith.addf %62, %72 : vector<32x96xf32>
    %74 = vector.broadcast %66 : vector<1x96xf32> to vector<32x96xf32>
    %75 = arith.addf %73, %74 : vector<32x96xf32>
    %c0_64 = arith.constant 0 : index
    %c0_65 = arith.constant 0 : index
    %76 = vector.load %arg26[%c0_64, %c0_65] : memref<96x32xf32, #tpu.memory_space<vmem>>, vector<96x32xf32>
    %c0_66 = arith.constant 0 : index
    %c0_67 = arith.constant 0 : index
    %77 = vector.load %arg27[%c0_66, %c0_67] : memref<1x32xf32, #tpu.memory_space<vmem>>, vector<1x32xf32>
    %cst_68 = arith.constant dense<0.000000e+00> : vector<32x32xf32>
    %78 = tpu.matmul %75, %76, %cst_68 {dimension_numbers = #tpu.dot_dimension_numbers<[1], [0], [0], [1], [0, 0, 1, 1], [], []>} : vector<32x96xf32>, vector<96x32xf32>, vector<32x32xf32> -> vector<32x32xf32>
    %79 = vector.broadcast %77 : vector<1x32xf32> to vector<32x32xf32>
    %80 = arith.addf %78, %79 : vector<32x32xf32>
    %81 = arith.addf %80, %58 : vector<32x32xf32>
    %82 = vector.extract_strided_slice %81 {offsets = [0, 0], sizes = [32, 16], strides = [1, 1]} : vector<32x32xf32> to vector<32x16xf32>
    %83 = vector.extract_strided_slice %81 {offsets = [0, 16], sizes = [32, 16], strides = [1, 1]} : vector<32x32xf32> to vector<32x16xf32>
    %84 = arith.addf %82, %83 : vector<32x16xf32>
    %85 = tpu.concatenate %61, %84 in 1 : vector<32x16xf32>, vector<32x16xf32> -> vector<32x32xf32>
    %c0_69 = arith.constant 0 : index
    %c0_70 = arith.constant 0 : index
    %86 = vector.load %arg28[%c0_69, %c0_70] : memref<32x32xf32, #tpu.memory_space<vmem>>, vector<32x32xf32>
    %c0_71 = arith.constant 0 : index
    %c0_72 = arith.constant 0 : index
    %87 = vector.load %arg29[%c0_71, %c0_72] : memref<1x32xf32, #tpu.memory_space<vmem>>, vector<1x32xf32>
    %c0_73 = arith.constant 0 : index
    %c0_74 = arith.constant 0 : index
    %88 = vector.load %arg30[%c0_73, %c0_74] : memref<32x32xf32, #tpu.memory_space<vmem>>, vector<32x32xf32>
    %c0_75 = arith.constant 0 : index
    %c0_76 = arith.constant 0 : index
    %89 = vector.load %arg31[%c0_75, %c0_76] : memref<1x32xf32, #tpu.memory_space<vmem>>, vector<1x32xf32>
    %cst_77 = arith.constant dense<0.000000e+00> : vector<32x32xf32>
    %90 = tpu.matmul %85, %86, %cst_77 {dimension_numbers = #tpu.dot_dimension_numbers<[1], [0], [0], [1], [0, 0, 1, 1], [], []>} : vector<32x32xf32>, vector<32x32xf32>, vector<32x32xf32> -> vector<32x32xf32>
    %91 = vector.broadcast %87 : vector<1x32xf32> to vector<32x32xf32>
    %92 = arith.addf %90, %91 : vector<32x32xf32>
    %cst_78 = arith.constant 0.000000e+00 : f32
    %93 = vector.broadcast %cst_78 : f32 to vector<32x32xf32>
    %94 = arith.maximumf %92, %93 : vector<32x32xf32>
    %cst_79 = arith.constant dense<0.000000e+00> : vector<32x32xf32>
    %95 = tpu.matmul %94, %88, %cst_79 {dimension_numbers = #tpu.dot_dimension_numbers<[1], [0], [0], [1], [0, 0, 1, 1], [], []>} : vector<32x32xf32>, vector<32x32xf32>, vector<32x32xf32> -> vector<32x32xf32>
    %96 = arith.addf %85, %95 : vector<32x32xf32>
    %97 = vector.broadcast %89 : vector<1x32xf32> to vector<32x32xf32>
    %98 = arith.addf %96, %97 : vector<32x32xf32>
    %c0_80 = arith.constant 0 : index
    %c0_81 = arith.constant 0 : index
    %99 = vector.load %arg32[%c0_80, %c0_81] : memref<32x8xf32, #tpu.memory_space<vmem>>, vector<32x8xf32>
    %c0_82 = arith.constant 0 : index
    %c0_83 = arith.constant 0 : index
    %100 = vector.load %arg33[%c0_82, %c0_83] : memref<1x8xf32, #tpu.memory_space<vmem>>, vector<1x8xf32>
    %cst_84 = arith.constant dense<0.000000e+00> : vector<32x8xf32>
    %101 = tpu.matmul %98, %99, %cst_84 {dimension_numbers = #tpu.dot_dimension_numbers<[1], [0], [0], [1], [0, 0, 1, 1], [], []>} : vector<32x32xf32>, vector<32x8xf32>, vector<32x8xf32> -> vector<32x8xf32>
    %102 = vector.broadcast %100 : vector<1x8xf32> to vector<32x8xf32>
    %103 = arith.addf %101, %102 : vector<32x8xf32>
    %c0_85 = arith.constant 0 : index
    %c0_86 = arith.constant 0 : index
    %104 = vector.load %arg34[%c0_85, %c0_86] : memref<32x8xf32, #tpu.memory_space<vmem>>, vector<32x8xf32>
    tpu.vector_store %arg34[%c0_85, %c0_86], %103 {strides = array<i32>} : memref<32x8xf32, #tpu.memory_space<vmem>>, vector<32x8xf32>,
    return
  }
}

</mosaic_0001>

<bundles_post_ra>
// kernel: stbalance_forward.1
= control target key start
LH: loop header
LB: loop body
LE: loop exit
PB: predicated region body
PF: predicated region fallthrough
CT: control target
= control target key end

     0   :  { %s2515_s3 = smov 8   ;;  %s2516_s7 = smov 2   ;;  %vm286_vm0 = vcmask 130048   ;;  %vm172_vm1 = vcmask 195584   ;;  %vm755_vm2 = vcmask 457728   ;;  %vm760_vm3 = vcmask 654336   ;;  %s3058_s0 = inlined_call_operand.smem [shape: u32[35], index: -1, kind: input, shape index: {}] }
   0x1   :  { %s1964_s6 = sld [smem:[%s3058_s0 + %s2515_s3]]   ;;  %s2517_s11 = smov 6   ;;  %vm801_vm4 = vcmask 916480   ;;  %vm1196_vm5 = vcmask 392192   ;;  %vm1201_vm6 = vcmask 523264   ;;  %vm1238_vm7 = vcmask 785408  }
   0x2   :  { %s1958_s10 = sld [smem:[%s3058_s0 + %s2516_s7]]   ;;  %s2518_s15 = smov 1   ;;  %vm1627_vm8 = vcmask 261120   ;;  %vm1948_vm9 = vcmask 64512  }
   0x3   :  { %s1962_s14 = sld [smem:[%s3058_s0 + %s2517_s11]]   ;;  %s2519_s19 = smov 10  }
   0x4   :  { %s2571_s18 = sld [smem:[%s3058_s0 + %s2518_s15]]   ;;  %s2520_s23 = smov 12  }
   0x5   :  { %s1966_s22 = sld [smem:[%s3058_s0 + %s2519_s19]]   ;;  %s2521_s27 = smov 5  }
   0x6   :  { %s2585_s26 = sld [smem:[%s3058_s0 + %s2520_s23]]   ;;  %s2522_s1 = smov 4  }
   0x7   :  { %v292_v0 = vld [vmem:[%s1964_s6 + $0x8] sm:$0xff]  ;;  %v291_v1 = vld [vmem:[%s1964_s6] sm:$0xff]  ;;  %s1961_s30 = sld [smem:[%s3058_s0 + %s2521_s27]]   ;;  %s2523_s8 = smov 24  }
   0x8   :  { %2214 = vmatprep.subr.mxu1 %v292_v0  ;;  %v150_v2 = vld [vmem:[%s1958_s10] sm:$0xff]  ;;  %v151_v3 = vld [vmem:[%s1958_s10 + $0x8] sm:$0xff]  ;;  %s1960_s4 = sld [smem:[%s3058_s0 + %s2522_s1]]   ;;  %s2524_s9 = smov 16  }
   0x9   :  { %2215 = vmatpush3.msra.mxu1 %v292_v0  ;;  %2218 = vmatprep.mubr.msk.f32.mxu1 %vm286_vm0, %v150_v2  ;;  %v164_v4 = vld [vmem:[%s1962_s14 + $0x10] sm:$0xff]  ;;  %v163_v5 = vld [vmem:[%s1962_s14 + $0x8] sm:$0xff]  ;;  %v162_v7 = vld [vmem:[%s1962_s14] sm:$0xff]  ;;  %s1_s7 = sld [smem:[%s3058_s0]]   ;;  %s2525_s10 = smov 9  }
   0xa   :  { %2216 = vmatprep.subr.mxu1 %v291_v1  ;;  %2202 = vmatprep.subr.mxu0 %v164_v4  ;;  %v146_v6 = vld [vmem:[%s2571_s18] sm:$0xff]  ;;  %v147_v8 = vld [vmem:[%s2571_s18 + $0x8] sm:$0xff]  ;;  %v148_v10 = vld [vmem:[%s2571_s18 + $0x10] sm:$0xff]  ;;  %s1965_s13 = sld [smem:[%s3058_s0 + %s2525_s10]]   ;;  %s2526_s14 = smov 3  }
   0xb   :  { %2217 = vmatpush3.msra.mxu1 %v291_v1  ;;  %2203 = vmatpush3.msra.mxu0 %v164_v4  ;;  %v384_v9 = vld [vmem:[%s1966_s22 + $0x8] sm:$0xff]  ;;  %v149_v11 = vld [vmem:[%s2571_s18 + $0x18] sm:$0xff]  ;;  %v383_v12 = vld [vmem:[%s1966_s22] sm:$0xff]  ;;  %s1959_s17 = sld [smem:[%s3058_s0 + %s2526_s14]]   ;;  %s2527_s18 = smov 7  }
   0xc   :  { %2219 = vmatmul.mubr.msk.f32.vlgmr.msra.gmra.mxu1 %vm286_vm0, %v151_v3  ;;  %2204 = vmatprep.subr.mxu0 %v163_v5  ;;  %v474_v13 = vld [vmem:[%s2585_s26 + $0x8] sm:$0xff]  ;;  %v473_v34 = vld [vmem:[%s2585_s26] sm:$0xff]  ;;  %s1963_s21 = sld [smem:[%s3058_s0 + %s2527_s18]]   ;;  %s2528_s22 = smov 56  }
   0xd   :  { %2205 = vmatpush3.msra.mxu0 %v163_v5  ;;  %2208 = vmatprep.mubr.msk.f32.mxu0 %vm172_vm1, %v146_v6  ;;  %v158_v14 = vld [vmem:[%s1961_s30] sm:$0xff]  ;;  %v159_v19 = vld [vmem:[%s1961_s30 + $0x8] sm:$0xff]  ;;  %v160_v23 = vld [vmem:[%s1961_s30 + $0x10] sm:$0xff]  ;;  %s2529_s23 = smov 14   ;;  %s2530_s27 = smov 11  }
   0xe   :  { %2206 = vmatprep.subr.mxu0 %v162_v7  ;;  %2221 = vmatprep.subr.mxu1 %v384_v9  ;;  %v154_v15 = vld [vmem:[%s1960_s4] sm:$0xff]  ;;  %v155_v17 = vld [vmem:[%s1960_s4 + $0x8] sm:$0xff]  ;;  %v157_v20 = vld [vmem:[%s1960_s4 + $0x18] sm:$0xff]  ;;  %s1970_s26 = sld [smem:[%s3058_s0 + %s2529_s23]]   ;;  %s2531_s1 = smov 13  }
   0xf   :  { %2207 = vmatpush3.msra.mxu0 %v162_v7  ;;  %2222 = vmatpush3.msra.mxu1 %v384_v9  ;;  %v142_v16 = vld [vmem:[%s1_s7] sm:$0xff]  ;;  %v143_v18 = vld [vmem:[%s1_s7 + $0x8] sm:$0xff]  ;;  %v156_v21 = vld [vmem:[%s1960_s4 + $0x10] sm:$0xff]  ;;  %s1969_s4 = sld [smem:[%s3058_s0 + %s2531_s1]]   ;;  %s2532_s10 = smov 15  }
  0x10   :  { %2209 = vmatmul.mubr.msk.f32.vlgmr.msra.gmra.mxu0 %vm172_vm1, %v147_v8  ;;  %2223 = vmatprep.subr.mxu1 %v383_v12  ;;  %v144_v22 = vld [vmem:[%s1_s7 + $0x10] sm:$0xff]  ;;  %v145_v24 = vld [vmem:[%s1_s7 + $0x18] sm:$0xff]  ;;  %v1996_v26 = vld [vmem:[%s1965_s13] ss:$0 sm:$0xff]  ;;  %s2706_s7 = sld [smem:[%s3058_s0 + %s2524_s9]]   ;;  %s2533_s14 = smov 18  }
  0x11   :  { %2211 = vmatprep.mubr.msk.f32.mxu0 %vm172_vm1, %v148_v10  ;;  %2224 = vmatpush3.msra.mxu1 %v383_v12  ;;  %v161_v25 = vld [vmem:[%s1961_s30 + $0x18] sm:$0xff]  ;;  %v152_v33 = vld [vmem:[%s1959_s17] sm:$0xff]  ;;  %v153_v35 = vld [vmem:[%s1959_s17 + $0x8] sm:$0xff]  ;;  %s1967_s30 = sld [smem:[%s3058_s0 + %s2530_s27]]   ;;  %s2534_s18 = smov 80  }
  0x12   :  { %2228 = vmatprep.subr.mxu1 %v474_v13  ;;  %675 = vrot.lane.b32.xlu1 %v158_v14, %s2523_s8  ;;  %v1991_v40 = vld [vmem:[%s1963_s21] ss:$0 sm:$0xff]  ;;  %s1971_s13 = sld [smem:[%s3058_s0 + %s2532_s10]]   ;;  %s2535_s19 = smov 20  }
  0x13   :  { %659 = vrot.lane.b32.xlu0 %v154_v15, %s2524_s9  ;;  %s2728_s17 = sld [smem:[%s3058_s0 + %s2533_s14]]   ;;  %s2536_s23 = smov 17  }
  0x14   :  { %2212 = vmatmul.mubr.msk.f32.gmra.mxu0 %vm172_vm1, %v149_v11  ;;  %v566_v55 = vld [vmem:[%s1970_s26 + $0x8] sm:$0xff]  ;;  %v565_v56 = vld [vmem:[%s1970_s26] sm:$0xff]  ;;  %s1973_s26 = sld [smem:[%s3058_s0 + %s2536_s23]]   ;;  %s2537_s27 = smov 19  }
  0x15   :  { %v2002_v3 = vld [vmem:[%s1969_s4] ss:$0 sm:$0xff]  ;;  %s2538_s1 = smov 21   ;;  %s2539_s5 = smov 112  }
  0x16   :  { %274 = vrot.lane.b32.xlu1 %v142_v16, %s2524_s9  ;;  %s1977_s4 = sld [smem:[%s3058_s0 + %s2538_s1]]   ;;  %s2540_s6 = smov 22  }
  0x17   :  { %661 = vrot.lane.b32.xlu0 %v155_v17, %s2524_s9  ;;  %v1999_v61 = vld [vmem:[%s1967_s30] ss:$0 sm:$0xff]  ;;  %s1975_s30 = sld [smem:[%s3058_s0 + %s2537_s27]]   ;;  %s2541_s12 = smov 64  }
  0x18   :  { %s2863_s11 = sld [smem:[%s3058_s0 + %s2540_s6]]   ;;  %s2542_s16 = smov 48  }
  0x19   :  { %s2893_s15 = sld [smem:[%s3058_s0 + %s2523_s8]]   ;;  %s2544_s20 = smov 23  }
  0x1a   :  { %276 = vrot.lane.b32.xlu1 %v143_v18, %s2524_s9  ;;  %s1979_s23 = sld [smem:[%s3058_s0 + %s2544_s20]]   ;;  %s2545_s24 = smov 25  }
  0x1b   :  { %677 = vrot.lane.b32.xlu0 %v159_v19, %s2523_s8  ;;  %v778_v19 = vld [vmem:[%s2706_s7 + $0x68] sm:$0xff]  ;;  %s1981_s27 = sld [smem:[%s3058_s0 + %s2545_s24]]   ;;  %s2546_s28 = smov 27  }
  0x1c   :  { %s1983_s1 = sld [smem:[%s3058_s0 + %s2546_s28]]   ;;  %s2547_s2 = smov 28  }
  0x1d   :  { %s1984_s6 = sld [smem:[%s3058_s0 + %s2547_s2]]  }
  0x1e   :  { %665 = vrot.lane.b32.xlu1 %v157_v20, %s2524_s9  ;;  %v777_v20 = vld [vmem:[%s2706_s7 + $0x60] sm:$0xff] }
  0x1f   :  { %663 = vrot.lane.b32.xlu0 %v156_v21, %s2524_s9  ;;  %v776_v21 = vld [vmem:[%s2706_s7 + $0x58] sm:$0xff] }
  0x22   :  { %278 = vrot.lane.b32.xlu1 %v144_v22, %s2524_s9  ;;  %v775_v22 = vld [vmem:[%s2706_s7 + $0x50] sm:$0xff] }
  0x23   :  { %679 = vrot.lane.b32.xlu0 %v160_v23, %s2523_s8  ;;  %v774_v23 = vld [vmem:[%s2706_s7 + $0x48] sm:$0xff] }
  0x26   :  { %280 = vrot.lane.b32.xlu1 %v145_v24, %s2524_s9  ;;  %v773_v24 = vld [vmem:[%s2706_s7 + $0x40] sm:$0xff] }
  0x27   :  { %681 = vrot.lane.b32.xlu0 %v161_v25, %s2523_s8  ;;  %v772_v25 = vld [vmem:[%s2706_s7 + $0x38] sm:$0xff] }
  0x84   :  { %v2624_v36 = vpop.permute.xlu1 %675 }
  0x85   :  { %v2650_v57 = vpop.permute.xlu0 %659 }
  0x88   :  { %v275_v37 = vpop.permute.xlu1 %274 }
  0x89   :  { %v2652_v58 = vpop.permute.xlu0 %661 }
  0x8c   :  { %v277_v38 = vpop.permute.xlu1 %276 }
  0x8d   :  { %v2654_v59 = vpop.permute.xlu0 %677 }
  0x90   :  { %v2629_v39 = vpop.permute.xlu1 %665 }
  0x91   :  { %v2659_v60 = vpop.permute.xlu0 %663 }
  0x94   :  { %v279_v41 = vpop.permute.xlu1 %278 }
  0x95   :  { %v2664_v62 = vpop.permute.xlu0 %679 }
  0x98   :  { %v281_v48 = vpop.permute.xlu1 %280 }
  0x99   :  { %v2672_v7 = vpop.permute.xlu0 %681 }
  0xcc   :  { %v2220_v27 = vpop.f32.mrf.mxu1 }
  0xcd   :  { %v378_v28 = vadd.f32 %v2220_v27, %v1996_v26  ;;  %v770_v27 = vld [vmem:[%s2706_s7 + $0x28] sm:$0xff] }
  0xce   :  { %v372_v29 = vpop.f32.mrf.mxu1 }
  0xcf   :  { %v373_v30 = vadd.f32 %v1996_v26, %v372_v29  ;;  %v382_v32 = vmax.f32 %v378_v28, 0.0  ;;  %v771_v26 = vld [vmem:[%s2706_s7 + $0x30] sm:$0xff]  ;;  %v769_v28 = vld [vmem:[%s2706_s7 + $0x20] sm:$0xff]  ;;  %v768_v29 = vld [vmem:[%s2706_s7 + $0x18] sm:$0xff] }
  0xd0   :  { %v2210_v42 = vpop.f32.mrf.mxu0 }
  0xd1   :  { %v381_v31 = vmax.f32 %v373_v30, 0.0  ;;  %v257_v43 = vadd.f32 %v2210_v42, %v1991_v40  ;;  %v767_v30 = vld [vmem:[%s2706_s7 + $0x10] sm:$0xff] }
  0xd2   :  { %v251_v44 = vpop.f32.mrf.mxu0 }
  0xd3   :  { %2225 = vmatprep.mubr.msk.f32.mxu1 %vm286_vm0, %v381_v31  ;;  %v252_v45 = vadd.f32 %v1991_v40, %v251_v44  ;;  %v2632_v46 = vsel %vm286_vm0, %v257_v43, %v277_v38  ;;  %v766_v31 = vld [vmem:[%s2706_s7 + $0x8] sm:$0xff] }
  0xd4   :  { %2226 = vmatmul.mubr.msk.f32.vlgmr.msra.gmra.mxu1 %vm286_vm0, %v382_v32  ;;  %v2213_v47 = vpop.f32.mrf.mxu0  ;;  %725 = vrot.lane.b32.xlu1 %v2632_v46, %s2528_s22  ;;  %v765_v32 = vld [vmem:[%s2706_s7] sm:$0xff] }
  0xd5   :  { %2229 = vmatpush3.msra.mxu1 %v474_v13  ;;  %2232 = vmatprep.mubr.msk.f32.mxu1 %vm286_vm0, %v152_v33  ;;  %v267_v49 = vadd.f32 %v2213_v47, %v1991_v40  ;;  %v2636_v50 = vsel %vm286_vm0, %v252_v45, %v275_v37  ;;  %v2005_v33 = vld [vmem:[%s1971_s13] ss:$0 sm:$0xff]  ;;  %v793_v47 = vld [vmem:[%s2728_s17 + $0x68] sm:$0xff] }
  0xd6   :  { %2230 = vmatprep.subr.mxu1 %v473_v34  ;;  %v261_v51 = vpop.f32.mrf.mxu0  ;;  %723 = vrot.lane.b32.xlu0 %v2636_v50, %s2528_s22 }
  0xd7   :  { %2231 = vmatpush3.msra.mxu1 %v473_v34  ;;  %v262_v52 = vadd.f32 %v1991_v40, %v261_v51  ;;  %v2640_v53 = vsel %vm286_vm0, %v267_v49, %v281_v48  ;;  %v792_v48 = vld [vmem:[%s2728_s17 + $0x60] sm:$0xff]  ;;  %2276 = vmatprep.subr.mxu0 %v793_v47  ;;  %v790_v51 = vld [vmem:[%s2728_s17 + $0x50] sm:$0xff] }
  0xd8   :  { %2233 = vmatmul.mubr.msk.f32.vlgmr.msra.gmra.mxu1 %vm286_vm0, %v153_v35  ;;  %729 = vrot.lane.b32.xlu1 %v2640_v53, %s2528_s22 }
  0xd9   :  { %v2647_v54 = vsel %vm286_vm0, %v262_v52, %v279_v41  ;;  %2235 = vmatprep.subr.mxu1 %v566_v55  ;;  %2277 = vmatpush3.msra.mxu0 %v793_v47  ;;  %v789_v52 = vld [vmem:[%s2728_s17 + $0x48] sm:$0xff] }
  0xda   :  { %727 = vrot.lane.b32.xlu0 %v2647_v54, %s2528_s22  ;;  %2236 = vmatpush3.msra.mxu1 %v566_v55  ;;  %v788_v55 = vld [vmem:[%s2728_s17 + $0x40] sm:$0xff]  ;;  %s2807_s22 = sld [smem:[%s3058_s0 + %s2535_s19]]  }
  0xdb   :  { %2237 = vmatprep.subr.mxu1 %v565_v56  ;;  %2278 = vmatprep.subr.mxu0 %v792_v48 }
  0xdc   :  { %2238 = vmatpush3.msra.mxu1 %v565_v56  ;;  %2279 = vmatpush3.msra.mxu0 %v792_v48  ;;  %v787_v56 = vld [vmem:[%s2728_s17 + $0x38] sm:$0xff] }
  0xdd   :  { %2242 = vmatprep.subr.mxu1 %v778_v19 }
 0x194   :  { %v2227_v63 = vpop.f32.mrf.mxu1 }
 0x195   :  { %v470_v0 = vadd.f32 %v2227_v63, %v1999_v61 }
 0x196   :  { %v464_v1 = vpop.f32.mrf.mxu1 }
 0x197   :  { %v465_v2 = vadd.f32 %v1999_v61, %v464_v1  ;;  %v688_v4 = vsel %vm286_vm0, %v470_v0, %v2652_v58  ;;  %v690_v9 = vsel %vm286_vm0, %v470_v0, %v2629_v39  ;;  %v724_v61 = vpop.permute.xlu0 %723 }
 0x198   :  { %v2234_v5 = vpop.f32.mrf.mxu1  ;;  %v2670_v6 = vsel %vm172_vm1, %v688_v4, %v2654_v59  ;;  %v2690_v15 = vsel %vm172_vm1, %v690_v9, %v2672_v7 }
 0x199   :  { %709 = vrot.lane.b32.xlu1 %v2670_v6, %s2523_s8  ;;  %v687_v8 = vsel %vm286_vm0, %v465_v2, %v2650_v57  ;;  %v560_v10 = vadd.f32 %v2234_v5, %v2002_v3  ;;  %v689_v14 = vsel %vm286_vm0, %v465_v2, %v2659_v60 }
 0x19a   :  { %v554_v11 = vpop.f32.mrf.mxu1  ;;  %v2682_v12 = vsel %vm172_vm1, %v687_v8, %v2624_v36  ;;  %v2696_v18 = vsel %vm172_vm1, %v689_v14, %v2664_v62 }
 0x19b   :  { %v555_v13 = vadd.f32 %v2002_v3, %v554_v11  ;;  %707 = vrot.lane.b32.xlu0 %v2682_v12, %s2523_s8  ;;  %v564_v17 = vmax.f32 %v560_v10, 0.0  ;;  %v728_v63 = vpop.permute.xlu0 %727 }
 0x19d   :  { %v563_v16 = vmax.f32 %v555_v13, 0.0  ;;  %713 = vrot.lane.b32.xlu1 %v2690_v15, %s2523_s8 }
 0x19f   :  { %2239 = vmatprep.mubr.msk.f32.mxu1 %vm286_vm0, %v563_v16  ;;  %711 = vrot.lane.b32.xlu0 %v2696_v18, %s2523_s8  ;;  %s2543_s8 = smov 26  }
 0x1a0   :  { %2240 = vmatmul.mubr.msk.f32.vlgmr.msra.gmra.mxu1 %vm286_vm0, %v564_v17  ;;  %s2962_s19 = sld [smem:[%s3058_s0 + %s2543_s8]]  }
 0x1a1   :  { %2243 = vmatpush3.msra.mxu1 %v778_v19 }
 0x1a2   :  { %2244 = vmatprep.subr.mxu1 %v777_v20 }
 0x1a3   :  { %2245 = vmatpush3.msra.mxu1 %v777_v20  ;;  %v783_v20 = vld [vmem:[%s2728_s17 + $0x18] sm:$0xff] }
 0x1a4   :  { %2246 = vmatprep.subr.mxu1 %v776_v21 }
 0x1a5   :  { %2247 = vmatpush3.msra.mxu1 %v776_v21  ;;  %v782_v21 = vld [vmem:[%s2728_s17 + $0x10] sm:$0xff] }
 0x1a6   :  { %2248 = vmatprep.subr.mxu1 %v775_v22 }
 0x1a7   :  { %2249 = vmatpush3.msra.mxu1 %v775_v22  ;;  %v781_v22 = vld [vmem:[%s2728_s17 + $0x8] sm:$0xff] }
 0x1a8   :  { %2250 = vmatprep.subr.mxu1 %v774_v23 }
 0x1a9   :  { %2251 = vmatpush3.msra.mxu1 %v774_v23  ;;  %v780_v23 = vld [vmem:[%s2728_s17] sm:$0xff] }
 0x1aa   :  { %2252 = vmatprep.subr.mxu1 %v773_v24 }
 0x1ab   :  { %2253 = vmatpush3.msra.mxu1 %v773_v24  ;;  %v1027_v24 = vld [vmem:[%s2807_s22 + $0x68] sm:$0xff] }
 0x1ac   :  { %2254 = vmatprep.subr.mxu1 %v772_v25 }
 0x1ad   :  { %2255 = vmatpush3.msra.mxu1 %v772_v25  ;;  %v1026_v25 = vld [vmem:[%s2807_s22 + $0x60] sm:$0xff] }
 0x1ae   :  { %2256 = vmatprep.subr.mxu1 %v771_v26 }
 0x1af   :  { %2257 = vmatpush3.msra.mxu1 %v771_v26  ;;  %v1025_v26 = vld [vmem:[%s2807_s22 + $0x58] sm:$0xff] }
 0x1b0   :  { %2258 = vmatprep.subr.mxu1 %v770_v27 }
 0x1b1   :  { %2259 = vmatpush3.msra.mxu1 %v770_v27  ;;  %v1024_v27 = vld [vmem:[%s2807_s22 + $0x50] sm:$0xff] }
 0x1b2   :  { %2260 = vmatprep.subr.mxu1 %v769_v28 }
 0x1b3   :  { %2261 = vmatpush3.msra.mxu1 %v769_v28  ;;  %v1023_v28 = vld [vmem:[%s2807_s22 + $0x48] sm:$0xff] }
 0x1b4   :  { %2262 = vmatprep.subr.mxu1 %v768_v29 }
 0x1b5   :  { %2263 = vmatpush3.msra.mxu1 %v768_v29  ;;  %v1022_v29 = vld [vmem:[%s2807_s22 + $0x40] sm:$0xff] }
 0x1b6   :  { %2264 = vmatprep.subr.mxu1 %v767_v30 }
 0x1b7   :  { %2265 = vmatpush3.msra.mxu1 %v767_v30  ;;  %v1021_v30 = vld [vmem:[%s2807_s22 + $0x38] sm:$0xff] }
 0x1b8   :  { %2266 = vmatprep.subr.mxu1 %v766_v31 }
 0x1b9   :  { %2267 = vmatpush3.msra.mxu1 %v766_v31  ;;  %v1020_v31 = vld [vmem:[%s2807_s22 + $0x30] sm:$0xff] }
 0x1ba   :  { %2268 = vmatprep.subr.mxu1 %v765_v32 }
 0x1bb   :  { %2269 = vmatpush3.msra.mxu1 %v765_v32  ;;  %v1019_v32 = vld [vmem:[%s2807_s22 + $0x28] sm:$0xff] }
 0x1bc   :  { %2310 = vmatprep.subr.mxu1 %v1027_v24 }
 0x20d   :  { %v708_v1 = vpop.permute.xlu0 %707 }
 0x20e   :  { %v751_v4 = vsel %vm172_vm1, %v2636_v50, %v708_v1 }
 0x20f   :  { %v756_v8 = vsel %vm755_vm2, %v751_v4, %v724_v61 }
 0x211   :  { %v712_v3 = vpop.permute.xlu0 %711 }
 0x212   :  { %v753_v10 = vsel %vm172_vm1, %v2647_v54, %v712_v3 }
 0x213   :  { %v758_v54 = vsel %vm755_vm2, %v753_v10, %v728_v63 }
 0x260   :  { %v2241_v34 = vpop.f32.mrf.mxu1 }
 0x261   :  { %v652_v35 = vadd.f32 %v2241_v34, %v2005_v33  ;;  %v2008_v34 = vld [vmem:[%s1973_s26] ss:$0 sm:$0xff]  ;;  %s2553_s26 = smov 34  }
 0x262   :  { %v646_v37 = vpop.f32.mrf.mxu1  ;;  %s1990_s29 = sld [smem:[%s3058_s0 + %s2553_s26]]  }
 0x263   :  { %v647_v38 = vadd.f32 %v2005_v33, %v646_v37  ;;  %v696_v40 = vsel %vm286_vm0, %v652_v35, %v2652_v58  ;;  %v698_v43 = vsel %vm286_vm0, %v652_v35, %v2629_v39  ;;  %v785_v58 = vld [vmem:[%s2728_s17 + $0x28] sm:$0xff]  ;;  %v1018_v33 = vld [vmem:[%s2807_s22 + $0x20] sm:$0xff] }
 0x264   :  { %v2734_v41 = vsel %vm172_vm1, %v696_v40, %v2654_v59  ;;  %v2752_v49 = vsel %vm172_vm1, %v698_v43, %v2672_v7  ;;  %v784_v59 = vld [vmem:[%s2728_s17 + $0x20] sm:$0xff] }
 0x265   :  { %741 = vrot.lane.b32.xlu1 %v2734_v41, %s2534_s18  ;;  %v695_v42 = vsel %vm286_vm0, %v647_v38, %v2650_v57  ;;  %v697_v45 = vsel %vm286_vm0, %v647_v38, %v2659_v60  ;;  %v786_v57 = vld [vmem:[%s2728_s17 + $0x30] sm:$0xff]  ;;  %v726_v60 = vpop.permute.xlu1 %725 }
 0x266   :  { %v2743_v44 = vsel %vm172_vm1, %v695_v42, %v2624_v36  ;;  %v791_v36 = vld [vmem:[%s2728_s17 + $0x58] sm:$0xff]  ;;  %v2758_v39 = vsel %vm172_vm1, %v697_v45, %v2664_v62 }
 0x267   :  { %739 = vrot.lane.b32.xlu0 %v2743_v44, %s2534_s18  ;;  %2280 = vmatprep.subr.mxu0 %v791_v36 }
 0x268   :  { %2281 = vmatpush3.msra.mxu0 %v791_v36 }
 0x269   :  { %745 = vrot.lane.b32.xlu1 %v2752_v49, %s2534_s18  ;;  %2282 = vmatprep.subr.mxu0 %v790_v51  ;;  %v730_v62 = vpop.permute.xlu1 %729 }
 0x26a   :  { %2283 = vmatpush3.msra.mxu0 %v790_v51 }
 0x26b   :  { %743 = vrot.lane.b32.xlu0 %v2758_v39, %s2534_s18  ;;  %2284 = vmatprep.subr.mxu0 %v789_v52  ;;  %s2551_s18 = smov 31  }
 0x26c   :  { %2285 = vmatpush3.msra.mxu0 %v789_v52  ;;  %s1987_s21 = sld [smem:[%s3058_s0 + %s2551_s18]]  }
 0x26d   :  { %2286 = vmatprep.subr.mxu0 %v788_v55  ;;  %v710_v0 = vpop.permute.xlu1 %709 }
 0x26e   :  { %2287 = vmatpush3.msra.mxu0 %v788_v55  ;;  %v752_v5 = vsel %vm172_vm1, %v2632_v46, %v710_v0  ;;  %v1017_v55 = vld [vmem:[%s2807_s22 + $0x18] sm:$0xff] }
 0x26f   :  { %2288 = vmatprep.subr.mxu0 %v787_v56  ;;  %v757_v11 = vsel %vm755_vm2, %v752_v5, %v726_v60 }
 0x270   :  { %2289 = vmatpush3.msra.mxu0 %v787_v56  ;;  %v1016_v56 = vld [vmem:[%s2807_s22 + $0x10] sm:$0xff] }
 0x271   :  { %2290 = vmatprep.subr.mxu0 %v786_v57  ;;  %v714_v2 = vpop.permute.xlu1 %713 }
 0x272   :  { %2291 = vmatpush3.msra.mxu0 %v786_v57  ;;  %v754_v46 = vsel %vm172_vm1, %v2640_v53, %v714_v2  ;;  %v1015_v57 = vld [vmem:[%s2807_s22 + $0x8] sm:$0xff] }
 0x273   :  { %2292 = vmatprep.subr.mxu0 %v785_v58  ;;  %v759_v17 = vsel %vm755_vm2, %v754_v46, %v730_v62  ;;  %v2017_v62 = vld [vmem:[%s1975_s30] ss:$0 sm:$0xff] }
 0x274   :  { %2293 = vmatpush3.msra.mxu0 %v785_v58  ;;  %v1014_v58 = vld [vmem:[%s2807_s22] sm:$0xff]  ;;  %s2552_s22 = smov 33  }
 0x275   :  { %2294 = vmatprep.subr.mxu0 %v784_v59  ;;  %s1989_s25 = sld [smem:[%s3058_s0 + %s2552_s22]]  }
 0x276   :  { %2295 = vmatpush3.msra.mxu0 %v784_v59 }
 0x277   :  { %2296 = vmatprep.subr.mxu0 %v783_v20 }
 0x278   :  { %2297 = vmatpush3.msra.mxu0 %v783_v20  ;;  %v1209_v20 = vld [vmem:[%s2863_s11 + $0x18] sm:$0xff] }
 0x279   :  { %2298 = vmatprep.subr.mxu0 %v782_v21 }
 0x27a   :  { %2299 = vmatpush3.msra.mxu0 %v782_v21  ;;  %v1207_v21 = vld [vmem:[%s2863_s11 + $0x8] sm:$0xff] }
 0x27b   :  { %2300 = vmatprep.subr.mxu0 %v781_v22 }
 0x27c   :  { %2301 = vmatpush3.msra.mxu0 %v781_v22  ;;  %v1206_v22 = vld [vmem:[%s2863_s11] sm:$0xff] }
 0x27d   :  { %2302 = vmatprep.subr.mxu0 %v780_v23 }
 0x27e   :  { %2303 = vmatpush3.msra.mxu0 %v780_v23 }
 0x2d7   :  { %v742_v7 = vpop.permute.xlu1 %741 }
 0x2d8   :  { %v2782_v50 = vsel %vm760_vm3, %v757_v11, %v742_v7 }
 0x2d9   :  { %v740_v9 = vpop.permute.xlu0 %739 }
 0x2da   :  { %v2777_v13 = vsel %vm760_vm3, %v756_v8, %v740_v9  ;;  %v2018_v9 = vld [vmem:[%s1977_s4] ss:$0 sm:$0xff] }
 0x2db   :  { %2270 = vmatprep.mubr.msk.f32.mxu1 %vm801_vm4, %v2777_v13  ;;  %v746_v14 = vpop.permute.xlu1 %745 }
 0x2dc   :  { %2271 = vmatmul.mubr.msk.f32.vlgmr.msra.gmra.mxu1 %vm801_vm4, %v2782_v50  ;;  %v2794_v53 = vsel %vm760_vm3, %v759_v17, %v746_v14  ;;  %v1217_v17 = vld [vmem:[%s2863_s11 + $0x58] sm:$0xff] }
 0x2dd   :  { %v744_v16 = vpop.permute.xlu0 %743  ;;  %2311 = vmatpush3.msra.mxu1 %v1027_v24  ;;  %2344 = vmatprep.subr.mxu0 %v1217_v17 }
 0x2de   :  { %v2791_v19 = vsel %vm760_vm3, %v758_v54, %v744_v16  ;;  %2312 = vmatprep.subr.mxu1 %v1026_v25 }
 0x2df   :  { %2273 = vmatprep.mubr.msk.f32.mxu1 %vm801_vm4, %v2791_v19  ;;  %2313 = vmatpush3.msra.mxu1 %v1026_v25 }
 0x2e0   :  { %2274 = vmatmul.mubr.msk.f32.gmra.mxu1 %vm801_vm4, %v2794_v53  ;;  %2314 = vmatprep.subr.mxu1 %v1025_v26 }
 0x2e1   :  { %2315 = vmatpush3.msra.mxu1 %v1025_v26  ;;  %v1230_v26 = vld [vmem:[%s2893_s15 + $0x58] sm:$0xff] }
 0x2e2   :  { %2316 = vmatprep.subr.mxu1 %v1024_v27 }
 0x2e3   :  { %2317 = vmatpush3.msra.mxu1 %v1024_v27 }
 0x2e4   :  { %2318 = vmatprep.subr.mxu1 %v1023_v28 }
 0x2e5   :  { %2319 = vmatpush3.msra.mxu1 %v1023_v28 }
 0x2e6   :  { %2320 = vmatprep.subr.mxu1 %v1022_v29 }
 0x2e7   :  { %2321 = vmatpush3.msra.mxu1 %v1022_v29 }
 0x2e8   :  { %2322 = vmatprep.subr.mxu1 %v1021_v30 }
 0x2e9   :  { %2323 = vmatpush3.msra.mxu1 %v1021_v30 }
 0x2ea   :  { %2324 = vmatprep.subr.mxu1 %v1020_v31 }
 0x2eb   :  { %2325 = vmatpush3.msra.mxu1 %v1020_v31 }
 0x2ec   :  { %2326 = vmatprep.subr.mxu1 %v1019_v32 }
 0x2ed   :  { %2327 = vmatpush3.msra.mxu1 %v1019_v32 }
 0x2ee   :  { %2328 = vmatprep.subr.mxu1 %v1018_v33 }
 0x2ef   :  { %2329 = vmatpush3.msra.mxu1 %v1018_v33 }
 0x2f0   :  { %2330 = vmatprep.subr.mxu1 %v1017_v55 }
 0x2f1   :  { %2331 = vmatpush3.msra.mxu1 %v1017_v55  ;;  %v1228_v55 = vld [vmem:[%s2893_s15 + $0x48] sm:$0xff] }
 0x2f2   :  { %2332 = vmatprep.subr.mxu1 %v1016_v56 }
 0x2f3   :  { %2333 = vmatpush3.msra.mxu1 %v1016_v56 }
 0x2f4   :  { %2334 = vmatprep.subr.mxu1 %v1015_v57 }
 0x2f5   :  { %2335 = vmatpush3.msra.mxu1 %v1015_v57 }
 0x2f6   :  { %2336 = vmatprep.subr.mxu1 %v1014_v58 }
 0x2f7   :  { %2337 = vmatpush3.msra.mxu1 %v1014_v58  ;;  %v1227_v58 = vld [vmem:[%s2893_s15 + $0x40] sm:$0xff] }
 0x39c   :  { %v2272_v35 = vpop.f32.mrf.mxu1 }
 0x39d   :  { %v886_v37 = vadd.f32 %v2272_v35, %v2008_v34 }
 0x39e   :  { %v880_v38 = vpop.f32.mrf.mxu1 }
 0x39f   :  { %v881_v40 = vadd.f32 %v2008_v34, %v880_v38  ;;  %v900_v45 = vmax.f32 %v886_v37, 0.0 }
 0x3a0   :  { %v2275_v42 = vpop.f32.mrf.mxu1 }
 0x3a1   :  { %v899_v43 = vmax.f32 %v881_v40, 0.0  ;;  %v896_v47 = vadd.f32 %v2275_v42, %v2008_v34 }
 0x3a2   :  { %v890_v48 = vpop.f32.mrf.mxu1 }
 0x3a3   :  { %v891_v36 = vadd.f32 %v2008_v34, %v890_v48  ;;  %2304 = vmatprep.mubr.msk.f32.mxu0 %vm801_vm4, %v899_v43  ;;  %v902_v52 = vmax.f32 %v896_v47, 0.0 }
 0x3a4   :  { %2305 = vmatmul.mubr.msk.f32.vlgmr.msra.gmra.mxu0 %vm801_vm4, %v900_v45 }
 0x3a5   :  { %v901_v51 = vmax.f32 %v891_v36, 0.0  ;;  %2345 = vmatpush3.msra.mxu0 %v1217_v17  ;;  %v1458_v17 = vld [vmem:[%s2962_s19 + $0x38] sm:$0xff] }
 0x3a7   :  { %2307 = vmatprep.mubr.msk.f32.mxu0 %vm801_vm4, %v901_v51  ;;  %v1229_v51 = vld [vmem:[%s2893_s15 + $0x50] sm:$0xff] }
 0x3a8   :  { %2308 = vmatmul.mubr.msk.f32.gmra.mxu0 %vm801_vm4, %v902_v52 }
 0x464   :  { %v2306_v59 = vpop.f32.mrf.mxu0 }
 0x465   :  { %v1001_v60 = vadd.f32 %v2306_v59, %v2782_v50 }
 0x466   :  { %v981_v61 = vpop.f32.mrf.mxu0 }
 0x467   :  { %v1000_v63 = vadd.f32 %v981_v61, %v2777_v13  ;;  %v1011_v2 = vadd.f32 %v2017_v62, %v1001_v60 }
 0x468   :  { %v2309_v0 = vpop.f32.mrf.mxu0 }
 0x469   :  { %v1010_v1 = vadd.f32 %v2017_v62, %v1000_v63  ;;  %v1003_v3 = vadd.f32 %v2309_v0, %v2794_v53  ;;  %v1215_v53 = vld [vmem:[%s2863_s11 + $0x48] sm:$0xff] }
 0x46a   :  { %v991_v4 = vpop.f32.mrf.mxu0 }
 0x46b   :  { %v1002_v5 = vadd.f32 %v991_v4, %v2791_v19  ;;  %2338 = vmatprep.mubr.msk.f32.mxu1 %vm801_vm4, %v1010_v1  ;;  %v1013_v8 = vadd.f32 %v2017_v62, %v1003_v3  ;;  %v1216_v19 = vld [vmem:[%s2863_s11 + $0x50] sm:$0xff]  ;;  %v1226_v1 = vld [vmem:[%s2893_s15 + $0x38] sm:$0xff]  ;;  %v1224_v3 = vld [vmem:[%s2893_s15 + $0x28] sm:$0xff] }
 0x46c   :  { %2339 = vmatmul.mubr.msk.f32.vlgmr.msra.gmra.mxu1 %vm801_vm4, %v1011_v2  ;;  %2346 = vmatprep.subr.mxu0 %v1216_v19  ;;  %v1225_v2 = vld [vmem:[%s2893_s15 + $0x30] sm:$0xff]  ;;  %v1223_v4 = vld [vmem:[%s2893_s15 + $0x20] sm:$0xff] }
 0x46d   :  { %v1012_v7 = vadd.f32 %v2017_v62, %v1002_v5  ;;  %2347 = vmatpush3.msra.mxu0 %v1216_v19  ;;  %v1222_v5 = vld [vmem:[%s2893_s15 + $0x18] sm:$0xff]  ;;  %v1457_v19 = vld [vmem:[%s2962_s19 + $0x30] sm:$0xff] }
 0x46e   :  { %2348 = vmatprep.subr.mxu0 %v1215_v53 }
 0x46f   :  { %2341 = vmatprep.mubr.msk.f32.mxu1 %vm801_vm4, %v1012_v7  ;;  %2349 = vmatpush3.msra.mxu0 %v1215_v53  ;;  %v1221_v7 = vld [vmem:[%s2893_s15 + $0x10] sm:$0xff]  ;;  %v1456_v53 = vld [vmem:[%s2962_s19 + $0x28] sm:$0xff] }
 0x470   :  { %2342 = vmatmul.mubr.msk.f32.gmra.mxu1 %vm801_vm4, %v1013_v8  ;;  %v1220_v8 = vld [vmem:[%s2893_s15 + $0x8] sm:$0xff] }
 0x52c   :  { %v2340_v10 = vpop.f32.mrf.mxu1 }
 0x52d   :  { %v2844_v11 = vadd.f32 %v2340_v10, %v2018_v9  ;;  %v1462_v10 = vld [vmem:[%s2962_s19 + $0x58] sm:$0xff] }
 0x52e   :  { %v1113_v13 = vpop.f32.mrf.mxu1  ;;  %2404 = vmatprep.subr.mxu1 %v1462_v10 }
 0x52f   :  { %v2846_v46 = vadd.f32 %v2018_v9, %v1113_v13  ;;  %1138 = vrot.lane.b32.xlu1 %v2844_v11, %s2539_s5  ;;  %v1461_v13 = vld [vmem:[%s2962_s19 + $0x50] sm:$0xff]  ;;  %2405 = vmatpush3.msra.mxu1 %v1462_v10 }
 0x530   :  { %v2343_v50 = vpop.f32.mrf.mxu1  ;;  %2406 = vmatprep.subr.mxu1 %v1461_v13 }
 0x531   :  { %v2850_v14 = vadd.f32 %v2343_v50, %v2018_v9  ;;  %1136 = vrot.lane.b32.xlu0 %v2846_v46, %s2539_s5  ;;  %v1460_v50 = vld [vmem:[%s2962_s19 + $0x48] sm:$0xff]  ;;  %2407 = vmatpush3.msra.mxu1 %v1461_v13 }
 0x532   :  { %v1123_v54 = vpop.f32.mrf.mxu1  ;;  %2408 = vmatprep.subr.mxu1 %v1460_v50 }
 0x533   :  { %v2854_v16 = vadd.f32 %v2018_v9, %v1123_v54  ;;  %1142 = vrot.lane.b32.xlu1 %v2850_v14, %s2539_s5  ;;  %v1219_v9 = vld [vmem:[%s2893_s15] sm:$0xff]  ;;  %2409 = vmatpush3.msra.mxu1 %v1460_v50  ;;  %s2550_s15 = smov 32  }
 0x534   :  { %v1459_v54 = vld [vmem:[%s2962_s19 + $0x40] sm:$0xff]  ;;  %s1988_s17 = sld [smem:[%s3058_s0 + %s2550_s15]]  }
 0x535   :  { %1140 = vrot.lane.b32.xlu0 %v2854_v16, %s2539_s5  ;;  %2410 = vmatprep.subr.mxu1 %v1459_v54 }
 0x536   :  { %2411 = vmatpush3.msra.mxu1 %v1459_v54 }
 0x537   :  { %1154 = vrot.lane.b32.xlu1 %v2670_v6, %s2524_s9  ;;  %v1214_v6 = vld [vmem:[%s2863_s11 + $0x40] sm:$0xff]  ;;  %2412 = vmatprep.subr.mxu1 %v1458_v17 }
 0x538   :  { %2350 = vmatprep.subr.mxu0 %v1214_v6  ;;  %2413 = vmatpush3.msra.mxu1 %v1458_v17 }
 0x539   :  { %1152 = vrot.lane.b32.xlu0 %v2682_v12, %s2524_s9  ;;  %v1213_v12 = vld [vmem:[%s2863_s11 + $0x38] sm:$0xff]  ;;  %2351 = vmatpush3.msra.mxu0 %v1214_v6  ;;  %v1455_v6 = vld [vmem:[%s2962_s19 + $0x20] sm:$0xff] }
 0x53a   :  { %2352 = vmatprep.subr.mxu0 %v1213_v12  ;;  %2414 = vmatprep.subr.mxu1 %v1457_v19 }
 0x53b   :  { %1182 = vrot.lane.b32.xlu1 %v2734_v41, %s2541_s12  ;;  %v1212_v41 = vld [vmem:[%s2863_s11 + $0x30] sm:$0xff]  ;;  %2353 = vmatpush3.msra.mxu0 %v1213_v12  ;;  %v2023_v12 = vld [vmem:[%s1979_s23] ss:$0 sm:$0xff] }
 0x53c   :  { %2354 = vmatprep.subr.mxu0 %v1212_v41  ;;  %2415 = vmatpush3.msra.mxu1 %v1457_v19 }
 0x53d   :  { %1180 = vrot.lane.b32.xlu0 %v2743_v44, %s2541_s12  ;;  %v1211_v44 = vld [vmem:[%s2863_s11 + $0x28] sm:$0xff]  ;;  %2355 = vmatpush3.msra.mxu0 %v1212_v41 }
 0x53e   :  { %2356 = vmatprep.subr.mxu0 %v1211_v44  ;;  %2416 = vmatprep.subr.mxu1 %v1456_v53 }
 0x53f   :  { %1158 = vrot.lane.b32.xlu1 %v2690_v15, %s2524_s9  ;;  %v1210_v15 = vld [vmem:[%s2863_s11 + $0x20] sm:$0xff]  ;;  %2357 = vmatpush3.msra.mxu0 %v1211_v44 }
 0x540   :  { %2358 = vmatprep.subr.mxu0 %v1210_v15  ;;  %2417 = vmatpush3.msra.mxu1 %v1456_v53 }
 0x541   :  { %1156 = vrot.lane.b32.xlu0 %v2696_v18, %s2524_s9  ;;  %2359 = vmatpush3.msra.mxu0 %v1210_v15  ;;  %v1208_v18 = vld [vmem:[%s2863_s11 + $0x10] sm:$0xff]  ;;  %s2549_s11 = smov 29  }
 0x542   :  { %2360 = vmatprep.subr.mxu0 %v1209_v20  ;;  %2418 = vmatprep.subr.mxu1 %v1455_v6  ;;  %s1985_s14 = sld [smem:[%s3058_s0 + %s2549_s11]]  }
 0x543   :  { %2361 = vmatpush3.msra.mxu0 %v1209_v20  ;;  %2419 = vmatpush3.msra.mxu1 %v1455_v6 }
 0x544   :  { %2362 = vmatprep.subr.mxu0 %v1208_v18 }
 0x545   :  { %2363 = vmatpush3.msra.mxu0 %v1208_v18 }
 0x546   :  { %2364 = vmatprep.subr.mxu0 %v1207_v21 }
 0x547   :  { %2365 = vmatpush3.msra.mxu0 %v1207_v21 }
 0x548   :  { %2366 = vmatprep.subr.mxu0 %v1206_v22 }
 0x549   :  { %2367 = vmatpush3.msra.mxu0 %v1206_v22 }
 0x54a   :  { %2374 = vmatprep.subr.mxu0 %v1230_v26 }
 0x5a1   :  { %v1139_v23 = vpop.permute.xlu1 %1138 }
 0x5a2   :  { %v2896_v24 = vadd.f32 %v1139_v23, %v2844_v11 }
 0x5a3   :  { %v1137_v25 = vpop.permute.xlu0 %1136 }
 0x5a4   :  { %v2900_v27 = vadd.f32 %v1137_v25, %v2846_v46  ;;  %1170 = vrot.lane.b32.xlu1 %v2896_v24, %s2542_s16 }
 0x5a5   :  { %v1143_v28 = vpop.permute.xlu1 %1142 }
 0x5a6   :  { %v2904_v29 = vadd.f32 %v1143_v28, %v2850_v14  ;;  %1168 = vrot.lane.b32.xlu0 %v2900_v27, %s2542_s16 }
 0x5a7   :  { %v1141_v30 = vpop.permute.xlu0 %1140 }
 0x5a8   :  { %v2908_v31 = vadd.f32 %v1141_v30, %v2854_v16  ;;  %1174 = vrot.lane.b32.xlu1 %v2904_v29, %s2542_s16 }
 0x5a9   :  { %v1155_v32 = vpop.permute.xlu1 %1154 }
 0x5aa   :  { %1172 = vrot.lane.b32.xlu0 %v2908_v31, %s2542_s16  ;;  %v1193_v42 = vsel %vm286_vm0, %v2896_v24, %v1155_v32  ;;  %v1454_v32 = vld [vmem:[%s2962_s19 + $0x18] sm:$0xff] }
 0x5ab   :  { %v1153_v33 = vpop.permute.xlu0 %1152  ;;  %2420 = vmatprep.subr.mxu1 %v1454_v32 }
 0x5ac   :  { %1186 = vrot.lane.b32.xlu1 %v2752_v49, %s2541_s12  ;;  %v1192_v43 = vsel %vm286_vm0, %v2900_v27, %v1153_v33  ;;  %2421 = vmatpush3.msra.mxu1 %v1454_v32  ;;  %v1453_v33 = vld [vmem:[%s2962_s19 + $0x10] sm:$0xff] }
 0x5ad   :  { %v1183_v34 = vpop.permute.xlu1 %1182  ;;  %2422 = vmatprep.subr.mxu1 %v1453_v33 }
 0x5ae   :  { %1184 = vrot.lane.b32.xlu0 %v2758_v39, %s2541_s12  ;;  %2423 = vmatpush3.msra.mxu1 %v1453_v33 }
 0x5af   :  { %v1181_v35 = vpop.permute.xlu0 %1180 }
 0x5b1   :  { %v1159_v37 = vpop.permute.xlu1 %1158 }
 0x5b2   :  { %v1195_v59 = vsel %vm286_vm0, %v2904_v29, %v1159_v37 }
 0x5b3   :  { %v1157_v38 = vpop.permute.xlu0 %1156 }
 0x5b4   :  { %v1194_v56 = vsel %vm286_vm0, %v2908_v31, %v1157_v38 }
 0x616   :  { %v1171_v40 = vpop.permute.xlu1 %1170 }
 0x617   :  { %v1198_v49 = vsel %vm1196_vm5, %v1193_v42, %v1171_v40  ;;  %v2032_v42 = vld [vmem:[%s1981_s27] ss:$0 sm:$0xff] }
 0x618   :  { %v1169_v39 = vpop.permute.xlu0 %1168  ;;  %v2926_v36 = vsel %vm1201_vm6, %v1198_v49, %v1183_v34  ;;  %v1452_v34 = vld [vmem:[%s2962_s19 + $0x8] sm:$0xff] }
 0x619   :  { %v1197_v45 = vsel %vm1196_vm5, %v1192_v43, %v1169_v39  ;;  %2424 = vmatprep.subr.mxu1 %v1452_v34 }
 0x61a   :  { %v1175_v47 = vpop.permute.xlu1 %1174  ;;  %v2923_v48 = vsel %vm1201_vm6, %v1197_v45, %v1181_v35  ;;  %2425 = vmatpush3.msra.mxu1 %v1452_v34  ;;  %v1451_v35 = vld [vmem:[%s2962_s19] sm:$0xff] }
 0x61b   :  { %2368 = vmatprep.mubr.msk.f32.mxu0 %vm1238_vm7, %v2923_v48  ;;  %v1200_v62 = vsel %vm1196_vm5, %v1195_v59, %v1175_v47  ;;  %2426 = vmatprep.subr.mxu1 %v1451_v35 }
 0x61c   :  { %2369 = vmatmul.mubr.msk.f32.vlgmr.msra.gmra.mxu0 %vm1238_vm7, %v2926_v36  ;;  %v1173_v52 = vpop.permute.xlu0 %1172  ;;  %2427 = vmatpush3.msra.mxu1 %v1451_v35  ;;  %v1843_v35 = vld [vmem:[%s1988_s17 + $0x18] sm:$0xff] }
 0x61d   :  { %2375 = vmatpush3.msra.mxu0 %v1230_v26  ;;  %v1199_v60 = vsel %vm1196_vm5, %v1194_v56, %v1173_v52 }
 0x61e   :  { %2376 = vmatprep.subr.mxu0 %v1229_v51  ;;  %v1187_v57 = vpop.permute.xlu1 %1186 }
 0x61f   :  { %2377 = vmatpush3.msra.mxu0 %v1229_v51  ;;  %v2945_v0 = vsel %vm1201_vm6, %v1200_v62, %v1187_v57 }
 0x620   :  { %v1185_v61 = vpop.permute.xlu0 %1184  ;;  %2378 = vmatprep.subr.mxu0 %v1228_v55 }
 0x621   :  { %v2942_v63 = vsel %vm1201_vm6, %v1199_v60, %v1185_v61  ;;  %2379 = vmatpush3.msra.mxu0 %v1228_v55 }
 0x622   :  { %2371 = vmatprep.mubr.msk.f32.mxu0 %vm1238_vm7, %v2942_v63  ;;  %2380 = vmatprep.subr.mxu0 %v1227_v58 }
 0x623   :  { %2372 = vmatmul.mubr.msk.f32.gmra.mxu0 %vm1238_vm7, %v2945_v0 }
 0x624   :  { %2381 = vmatpush3.msra.mxu0 %v1227_v58 }
 0x625   :  { %2382 = vmatprep.subr.mxu0 %v1226_v1 }
 0x626   :  { %2383 = vmatpush3.msra.mxu0 %v1226_v1 }
 0x627   :  { %2384 = vmatprep.subr.mxu0 %v1225_v2 }
 0x628   :  { %2385 = vmatpush3.msra.mxu0 %v1225_v2 }
 0x629   :  { %2386 = vmatprep.subr.mxu0 %v1224_v3 }
 0x62a   :  { %2387 = vmatpush3.msra.mxu0 %v1224_v3  ;;  %v1614_v3 = vld [vmem:[%s1984_s6 + $0x18] sm:$0xff] }
 0x62b   :  { %2388 = vmatprep.subr.mxu0 %v1223_v4 }
 0x62c   :  { %2389 = vmatpush3.msra.mxu0 %v1223_v4 }
 0x62d   :  { %2390 = vmatprep.subr.mxu0 %v1222_v5 }
 0x62e   :  { %2391 = vmatpush3.msra.mxu0 %v1222_v5  ;;  %v1611_v5 = vld [vmem:[%s1984_s6] sm:$0xff] }
 0x62f   :  { %2392 = vmatprep.subr.mxu0 %v1221_v7 }
 0x630   :  { %2393 = vmatpush3.msra.mxu0 %v1221_v7 }
 0x631   :  { %2394 = vmatprep.subr.mxu0 %v1220_v8 }
 0x632   :  { %2395 = vmatpush3.msra.mxu0 %v1220_v8 }
 0x633   :  { %2396 = vmatprep.subr.mxu0 %v1219_v9 }
 0x634   :  { %2397 = vmatpush3.msra.mxu0 %v1219_v9 }
 0x635   :  { %2434 = vmatprep.subr.mxu0 %v1614_v3 }
 0x6dc   :  { %v2370_v41 = vpop.f32.mrf.mxu0 }
 0x6dd   :  { %v1323_v44 = vadd.f32 %v2370_v41, %v2023_v12 }
 0x6de   :  { %v1317_v15 = vpop.f32.mrf.mxu0 }
 0x6df   :  { %v1318_v20 = vadd.f32 %v2023_v12, %v1317_v15  ;;  %v1337_v21 = vmax.f32 %v1323_v44, 0.0  ;;  %v2038_v15 = vld [vmem:[%s1985_s14] ss:$0 sm:$0xff] }
 0x6e1   :  { %v1336_v18 = vmax.f32 %v1318_v20, 0.0 }
 0x6e3   :  { %v2373_v22 = vpop.f32.mrf.mxu0  ;;  %2398 = vmatprep.mubr.msk.f32.mxu0 %vm1238_vm7, %v1336_v18 }
 0x6e4   :  { %2399 = vmatmul.mubr.msk.f32.vlgmr.msra.gmra.mxu0 %vm1238_vm7, %v1337_v21  ;;  %v1333_v23 = vadd.f32 %v2373_v22, %v2023_v12 }
 0x6e5   :  { %v1327_v25 = vpop.f32.mrf.mxu0  ;;  %2435 = vmatpush3.msra.mxu0 %v1614_v3 }
 0x6e6   :  { %v1328_v26 = vadd.f32 %v2023_v12, %v1327_v25  ;;  %v1339_v30 = vmax.f32 %v1333_v23, 0.0 }
 0x6e8   :  { %v1338_v28 = vmax.f32 %v1328_v26, 0.0 }
 0x6ea   :  { %2401 = vmatprep.mubr.msk.f32.mxu0 %vm1238_vm7, %v1338_v28 }
 0x6eb   :  { %2402 = vmatmul.mubr.msk.f32.gmra.mxu0 %vm1238_vm7, %v1339_v30 }
 0x7a4   :  { %v2400_v37 = vpop.f32.mrf.mxu0 }
 0x7a5   :  { %v1438_v38 = vadd.f32 %v2400_v37, %v2926_v36  ;;  %v1842_v37 = vld [vmem:[%s1988_s17 + $0x10] sm:$0xff] }
 0x7a6   :  { %v1418_v40 = vpop.f32.mrf.mxu0 }
 0x7a7   :  { %v1437_v43 = vadd.f32 %v1418_v40, %v2923_v48  ;;  %v1448_v39 = vadd.f32 %v2032_v42, %v1438_v38  ;;  %v2033_v48 = vld [vmem:[%s1983_s1] ss:$0 sm:$0xff]  ;;  %v1841_v38 = vld [vmem:[%s1988_s17 + $0x8] sm:$0xff] }
 0x7a8   :  { %v1840_v40 = vld [vmem:[%s1988_s17] sm:$0xff] }
 0x7a9   :  { %v1447_v49 = vadd.f32 %v2032_v42, %v1437_v43 }
 0x7ab   :  { %v2403_v45 = vpop.f32.mrf.mxu0  ;;  %2428 = vmatprep.mubr.msk.f32.mxu1 %vm1238_vm7, %v1447_v49 }
 0x7ac   :  { %2429 = vmatmul.mubr.msk.f32.vlgmr.msra.gmra.mxu1 %vm1238_vm7, %v1448_v39  ;;  %v1440_v47 = vadd.f32 %v2403_v45, %v2945_v0  ;;  %v2047_v39 = vld [vmem:[%s1987_s21] ss:$0 sm:$0xff] }
 0x7ad   :  { %v1428_v51 = vpop.f32.mrf.mxu0 }
 0x7ae   :  { %v1439_v52 = vadd.f32 %v1428_v51, %v2942_v63  ;;  %v1450_v56 = vadd.f32 %v2032_v42, %v1440_v47 }
 0x7b0   :  { %v1449_v55 = vadd.f32 %v2032_v42, %v1439_v52 }
 0x7b2   :  { %2431 = vmatprep.mubr.msk.f32.mxu1 %vm1238_vm7, %v1449_v55 }
 0x7b3   :  { %2432 = vmatmul.mubr.msk.f32.gmra.mxu1 %vm1238_vm7, %v1450_v56 }
 0x86c   :  { %v2430_v36 = vpop.f32.mrf.mxu1 }
 0x86d   :  { %v1554_v57 = vadd.f32 %v2430_v36, %v2033_v48 }
 0x86e   :  { %v1548_v58 = vpop.f32.mrf.mxu1 }
 0x86f   :  { %v1568_v59 = vadd.f32 %v1554_v57, %v2844_v11  ;;  %v1549_v60 = vadd.f32 %v2033_v48, %v1548_v58  ;;  %v1613_v11 = vld [vmem:[%s1984_s6 + $0x10] sm:$0xff]  ;;  %v2048_v58 = vld [vmem:[%s1989_s25] ss:$0 sm:$0xff] }
 0x870   :  { %2436 = vmatprep.subr.mxu0 %v1613_v11 }
 0x871   :  { %v1567_v61 = vadd.f32 %v1549_v60, %v2846_v46  ;;  %1577 = vrot.lane.b32.xlu1 %v1568_v59, %s2539_s5  ;;  %2437 = vmatpush3.msra.mxu0 %v1613_v11  ;;  %v1612_v46 = vld [vmem:[%s1984_s6 + $0x8] sm:$0xff] }
 0x872   :  { %2438 = vmatprep.subr.mxu0 %v1612_v46 }
 0x873   :  { %1575 = vrot.lane.b32.xlu0 %v1567_v61, %s2539_s5  ;;  %v2433_v62 = vpop.f32.mrf.mxu1  ;;  %2439 = vmatpush3.msra.mxu0 %v1612_v46 }
 0x874   :  { %v1564_v63 = vadd.f32 %v2433_v62, %v2033_v48  ;;  %2440 = vmatprep.subr.mxu0 %v1611_v5 }
 0x875   :  { %v1558_v0 = vpop.f32.mrf.mxu1  ;;  %2441 = vmatpush3.msra.mxu0 %v1611_v5 }
 0x876   :  { %v1570_v1 = vadd.f32 %v1564_v63, %v2850_v14  ;;  %v1559_v2 = vadd.f32 %v2033_v48, %v1558_v0  ;;  %2462 = vmatprep.subr.mxu0 %v1843_v35 }
 0x878   :  { %v1569_v4 = vadd.f32 %v1559_v2, %v2854_v16  ;;  %1581 = vrot.lane.b32.xlu1 %v1570_v1, %s2539_s5 }
 0x87a   :  { %1579 = vrot.lane.b32.xlu0 %v1569_v4, %s2539_s5 }
 0x8e3   :  { %v1578_v14 = vpop.permute.xlu1 %1577 }
 0x8e4   :  { %v1588_v7 = vadd.f32 %v1578_v14, %v1568_v59 }
 0x8e5   :  { %v1576_v8 = vpop.permute.xlu0 %1575 }
 0x8e6   :  { %v1587_v9 = vadd.f32 %v1576_v8, %v1567_v61  ;;  %1597 = vrot.lane.b32.xlu1 %v1588_v7, %s2524_s9 }
 0x8e8   :  { %1595 = vrot.lane.b32.xlu0 %v1587_v9, %s2524_s9 }
 0x8ea   :  { %v1582_v16 = vpop.permute.xlu1 %1581 }
 0x8eb   :  { %v1590_v10 = vadd.f32 %v1582_v16, %v1570_v1 }
 0x8ec   :  { %v1580_v13 = vpop.permute.xlu0 %1579 }
 0x8ed   :  { %v1589_v50 = vadd.f32 %v1580_v13, %v1569_v4  ;;  %1601 = vrot.lane.b32.xlu1 %v1590_v10, %s2524_s9 }
 0x8ef   :  { %1599 = vrot.lane.b32.xlu0 %v1589_v50, %s2524_s9  ;;  %s2548_s9 = smov 30  }
 0x8f0   :  { %s1986_s10 = sld [smem:[%s3058_s0 + %s2548_s9]]  }
 0x958   :  { %v1598_v54 = vpop.permute.xlu1 %1597 }
 0x959   :  { %v1608_v53 = vsel %vm286_vm0, %v2896_v24, %v1598_v54  ;;  %v1619_v24 = vld [vmem:[%s1986_s10 + $0x18] sm:$0xff] }
 0x95a   :  { %v1596_v17 = vpop.permute.xlu0 %1595  ;;  %2448 = vmatprep.subr.mxu1 %v1619_v24 }
 0x95b   :  { %v3014_v19 = vsel %vm286_vm0, %v2900_v27, %v1596_v17  ;;  %2449 = vmatpush3.msra.mxu1 %v1619_v24  ;;  %v1618_v27 = vld [vmem:[%s1986_s10 + $0x10] sm:$0xff] }
 0x95c   :  { %2442 = vmatprep.mubr.msk.f32.mxu0 %vm1627_vm8, %v3014_v19  ;;  %2450 = vmatprep.subr.mxu1 %v1618_v27 }
 0x95d   :  { %2443 = vmatmul.mubr.msk.f32.vlgmr.msra.gmra.mxu0 %vm1627_vm8, %v1608_v53  ;;  %2451 = vmatpush3.msra.mxu1 %v1618_v27 }
 0x95e   :  { %2463 = vmatpush3.msra.mxu0 %v1843_v35 }
 0x95f   :  { %v1602_v6 = vpop.permute.xlu1 %1601  ;;  %2464 = vmatprep.subr.mxu0 %v1842_v37 }
 0x960   :  { %v1610_v44 = vsel %vm286_vm0, %v2904_v29, %v1602_v6  ;;  %v1616_v29 = vld [vmem:[%s1986_s10] sm:$0xff]  ;;  %2465 = vmatpush3.msra.mxu0 %v1842_v37 }
 0x961   :  { %v1600_v12 = vpop.permute.xlu0 %1599  ;;  %2466 = vmatprep.subr.mxu0 %v1841_v38 }
 0x962   :  { %v3023_v41 = vsel %vm286_vm0, %v2908_v31, %v1600_v12  ;;  %v1617_v31 = vld [vmem:[%s1986_s10 + $0x8] sm:$0xff]  ;;  %2467 = vmatpush3.msra.mxu0 %v1841_v38 }
 0x963   :  { %2445 = vmatprep.mubr.msk.f32.mxu0 %vm1627_vm8, %v3023_v41  ;;  %2452 = vmatprep.subr.mxu1 %v1617_v31 }
 0x964   :  { %2446 = vmatmul.mubr.msk.f32.gmra.mxu0 %vm1627_vm8, %v1610_v44  ;;  %2453 = vmatpush3.msra.mxu1 %v1617_v31 }
 0x965   :  { %2454 = vmatprep.subr.mxu1 %v1616_v29  ;;  %2468 = vmatprep.subr.mxu0 %v1840_v40 }
 0x966   :  { %2455 = vmatpush3.msra.mxu1 %v1616_v29  ;;  %2469 = vmatpush3.msra.mxu0 %v1840_v40 }
 0xa1d   :  { %v2444_v20 = vpop.f32.mrf.mxu0 }
 0xa1e   :  { %v1712_v18 = vadd.f32 %v2444_v20, %v2038_v15 }
 0xa1f   :  { %v1706_v21 = vpop.f32.mrf.mxu0 }
 0xa20   :  { %v1707_v22 = vadd.f32 %v2038_v15, %v1706_v21  ;;  %v1726_v25 = vmax.f32 %v1712_v18, 0.0 }
 0xa22   :  { %v1725_v23 = vmax.f32 %v1707_v22, 0.0 }
 0xa24   :  { %v2447_v26 = vpop.f32.mrf.mxu0  ;;  %2456 = vmatprep.mubr.msk.f32.mxu1 %vm1627_vm8, %v1725_v23 }
 0xa25   :  { %2457 = vmatmul.mubr.msk.f32.vlgmr.msra.gmra.mxu1 %vm1627_vm8, %v1726_v25  ;;  %v1722_v28 = vadd.f32 %v2447_v26, %v2038_v15 }
 0xa26   :  { %v1716_v30 = vpop.f32.mrf.mxu0 }
 0xa27   :  { %v1717_v32 = vadd.f32 %v2038_v15, %v1716_v30  ;;  %v1728_v34 = vmax.f32 %v1722_v28, 0.0 }
 0xa29   :  { %v1727_v33 = vmax.f32 %v1717_v32, 0.0 }
 0xa2b   :  { %2459 = vmatprep.mubr.msk.f32.mxu1 %vm1627_vm8, %v1727_v33 }
 0xa2c   :  { %2460 = vmatmul.mubr.msk.f32.gmra.mxu1 %vm1627_vm8, %v1728_v34 }
 0xae5   :  { %v2458_v42 = vpop.f32.mrf.mxu1 }
 0xae6   :  { %v1827_v43 = vadd.f32 %v2458_v42, %v1608_v53 }
 0xae7   :  { %v1807_v49 = vpop.f32.mrf.mxu1 }
 0xae8   :  { %v1826_v45 = vadd.f32 %v1807_v49, %v3014_v19  ;;  %v1837_v51 = vadd.f32 %v2047_v39, %v1827_v43 }
 0xaea   :  { %v1836_v47 = vadd.f32 %v2047_v39, %v1826_v45 }
 0xaec   :  { %v2461_v52 = vpop.f32.mrf.mxu1  ;;  %2470 = vmatprep.mubr.msk.f32.mxu0 %vm1627_vm8, %v1836_v47 }
 0xaed   :  { %2471 = vmatmul.mubr.msk.f32.vlgmr.msra.gmra.mxu0 %vm1627_vm8, %v1837_v51  ;;  %v1829_v55 = vadd.f32 %v2461_v52, %v1610_v44 }
 0xaee   :  { %v1817_v56 = vpop.f32.mrf.mxu1 }
 0xaef   :  { %v1828_v48 = vadd.f32 %v1817_v56, %v3023_v41  ;;  %v1839_v57 = vadd.f32 %v2047_v39, %v1829_v55 }
 0xaf1   :  { %v1838_v36 = vadd.f32 %v2047_v39, %v1828_v48 }
 0xaf3   :  { %2473 = vmatprep.mubr.msk.f32.mxu0 %vm1627_vm8, %v1838_v36 }
 0xaf4   :  { %2474 = vmatmul.mubr.msk.f32.gmra.mxu0 %vm1627_vm8, %v1839_v57 }
 0xbad   :  { %v2472_v59 = vpop.f32.mrf.mxu0 }
 0xbae   :  { %v1935_v60 = vadd.f32 %v2472_v59, %v2048_v58 }
 0xbaf   :  { %v1929_v61 = vpop.f32.mrf.mxu0 }
 0xbb0   :  { %1950 = vst.msk [vmem:[%s1990_s29 + $0x8] sm:$0xff] %vm1948_vm9, %v1935_v60  ;;  %v1930_v62 = vadd.f32 %v2048_v58, %v1929_v61 }
 0xbb2   :  { %1949 = vst.msk [vmem:[%s1990_s29] sm:$0xff] %vm1948_vm9, %v1930_v62 }
 0xbb4   :  { %v2475_v63 = vpop.f32.mrf.mxu0 }
 0xbb5   :  { %v1945_v0 = vadd.f32 %v2475_v63, %v2048_v58 }
 0xbb6   :  { %v1939_v1 = vpop.f32.mrf.mxu0 }
 0xbb7   :  { %1952 = vst.msk [vmem:[%s1990_s29 + $0x18] sm:$0xff] %vm1948_vm9, %v1945_v0  ;;  %v1940_v2 = vadd.f32 %v2048_v58, %v1939_v1 }
 0xbb9   :  { %1951 = vst.msk [vmem:[%s1990_s29 + $0x10] sm:$0xff] %vm1948_vm9, %v1940_v2 }

</bundles_post_ra>
